<compile_context>
chip_gen: v7x
topology: tpu7x:2x2x1
jax: 0.10.0
libtpu: 0.0.40
codegen_flags: <defaults>
</compile_context>

<pallas_src>
import jax
import jax.numpy as jnp
from jax.experimental import pallas as pl
from jax.experimental.pallas import tpu as pltpu


# ----------------------------------------------------------------------------
# Fused Pallas kernel: shortcut-conv + conv1 + BN1 + ELU + conv2 + BN2 +
# residual add + ELU.  Single invocation, everything resident in VMEM.
# ----------------------------------------------------------------------------
def _make_fused_kernel(n_nodes: int, c_out: int, k1: int, eps: float = 1e-5):
    N, CO, K = n_nodes, c_out, k1

    def batchnorm(v, gamma, beta):
        # Training-mode batch statistics over the node axis; affine folded into
        # one scale/shift pair (single pass over v in the epilogue).
        mean = jnp.mean(v, axis=0, keepdims=True)
        var = jnp.maximum(jnp.mean(v * v, axis=0, keepdims=True) - mean * mean, 0.0)
        scale = gamma * jax.lax.rsqrt(var + eps)
        return v * scale + (beta - mean * scale)

    def elu(v):
        # ELU(alpha=1); min() keeps exp() in range on the discarded lanes.
        return jnp.where(v > 0.0, v, jnp.exp(jnp.minimum(v, 0.0)) - 1.0)

    def kernel(x_ref, wa_ref, wb_ref, b5_ref, b1_ref, ep_ref, o_ref, xw_ref):
        ep = ep_ref[...]                                     # [9, CO] f32
        bias1, gamma1, beta1 = ep[0:1], ep[1:2], ep[2:3]
        bias2, gamma2, beta2 = ep[3:4], ep[4:5], ep[5:6]
        bias_s, gamma_s, beta_s = ep[6:7], ep[7:8], ep[8:9]

        # ---- group A (LHS = x): conv1 spline kernels, shortcut spline kernel
        #      and both root weights in ONE wide bf16 matmul -----------------
        xwa = jnp.dot(x_ref[...], wa_ref[...],
                      preferred_element_type=jnp.float32)    # [N, (K+3)*CO] f32
        # relayout the K spline slabs to (kernel-major, node) rows for stage 2
        for k in range(K):
            xw_ref[k * N:(k + 1) * N, :] = (
                xwa[:, k * CO:(k + 1) * CO].astype(xw_ref.dtype))
        xw_sc = xwa[:, K * CO:(K + 1) * CO]                  # shortcut spline slab
        root1 = xwa[:, (K + 1) * CO:(K + 2) * CO]            # x @ root  (conv1)
        root_s = xwa[:, (K + 2) * CO:(K + 3) * CO]           # x @ root  (shortcut)

        # shortcut branch: dense 1-kernel basis aggregation + root + bias + BN
        conv_s = jnp.dot(b1_ref[...], xw_sc.astype(b1_ref.dtype),
                         preferred_element_type=jnp.float32) + root_s + bias_s
        shortcut = batchnorm(conv_s, gamma_s, beta_s)

        # conv1 stage 2: one big contraction over all (kernel, src-node) pairs
        conv1 = jnp.dot(b5_ref[...], xw_ref[...],
                        preferred_element_type=jnp.float32) + root1 + bias1
        h1 = elu(batchnorm(conv1, gamma1, beta1)).astype(wb_ref.dtype)

        # ---- group B (LHS = h1): conv2 spline kernels + root, one wide dot --
        xwb = jnp.dot(h1, wb_ref[...],
                      preferred_element_type=jnp.float32)    # [N, (K+1)*CO] f32
        for k in range(K):
            xw_ref[k * N:(k + 1) * N, :] = (
                xwb[:, k * CO:(k + 1) * CO].astype(xw_ref.dtype))
        root2 = xwb[:, K * CO:(K + 1) * CO]

        conv2 = jnp.dot(b5_ref[...], xw_ref[...],
                        preferred_element_type=jnp.float32) + root2 + bias2
        out = elu(batchnorm(conv2, gamma2, beta2) + shortcut)
        o_ref[...] = out.astype(o_ref.dtype)

    return kernel


def fused_residual_block(x_bf, wa, wb, b5cat, b1cat, ep, *, n_nodes, c_out, k1):
    """Single fused pallas_call for the whole residual block."""
    flops = 2 * (
        n_nodes * x_bf.shape[1] * wa.shape[1]        # group A wide dot
        + n_nodes * (k1 * n_nodes) * c_out           # conv1 stage 2
        + n_nodes * n_nodes * c_out                  # shortcut stage 2
        + n_nodes * c_out * wb.shape[1]              # group B wide dot
        + n_nodes * (k1 * n_nodes) * c_out)          # conv2 stage 2
    bytes_accessed = (x_bf.size * 2 + wa.size * 2 + wb.size * 2
                      + b5cat.size * 2 + b1cat.size * 2 + ep.size * 4
                      + n_nodes * c_out * 4)
    vmem = pl.BlockSpec(memory_space=pltpu.MemorySpace.VMEM)
    return pl.pallas_call(
        _make_fused_kernel(n_nodes, c_out, k1),
        out_shape=jax.ShapeDtypeStruct((n_nodes, c_out), jnp.float32),
        in_specs=[vmem] * 6,
        out_specs=vmem,
        scratch_shapes=[pltpu.VMEM((k1 * n_nodes, c_out), jnp.bfloat16)],
        cost_estimate=pl.CostEstimate(flops=flops,
                                      transcendentals=4 * n_nodes * c_out,
                                      bytes_accessed=bytes_accessed),
    )(x_bf, wa, wb, b5cat, b1cat, ep)


# ----------------------------------------------------------------------------
# Plain-JAX glue: degree-1 open B-spline basis, dense-basis scatter, packing.
# (Irregular scatter work is one-time prep; the hot path is the kernel above.)
# ----------------------------------------------------------------------------
def spline_basis(pseudo, kernel_size, degree=1):
    """pseudo: [E, D] in [0,1]. Returns basis [E, S], weight_index [E, S]."""
    E, D = pseudo.shape
    S = (degree + 1) ** D
    basis_cols, widx_cols = [], []
    for s in range(S):
        k = s
        wi = jnp.zeros((E,), jnp.int32)
        wi_offset = 1
        b = jnp.ones((E,), jnp.float32)
        for d in range(D):
            k_mod = k % (degree + 1)
            k //= (degree + 1)
            ks = kernel_size[d]
            v = pseudo[:, d] * (ks - degree)                 # open spline
            v_floor = jnp.floor(v)
            frac = v - v_floor
            # clamp the top knot (open spline): pseudo == 1.0 must not wrap
            idx = jnp.clip(v_floor.astype(jnp.int32) + k_mod, 0, ks - 1)
            wi = wi + idx * wi_offset
            wi_offset *= ks
            b = b * ((1.0 - frac) if k_mod == 0 else frac)
        basis_cols.append(b)
        widx_cols.append(wi)
    return jnp.stack(basis_cols, axis=1), jnp.stack(widx_cols, axis=1)


def build_dense_basis(edge_index, basis, widx, num_nodes, K):
    """Dense B[k, dst, src] = sum of basis weights hitting spline kernel k."""
    src, dst = edge_index[0], edge_index[1]
    flat = (widx * (num_nodes * num_nodes)
            + dst[:, None] * num_nodes + src[:, None]).reshape(-1)
    B = jnp.zeros((K * num_nodes * num_nodes,), jnp.float32)
    B = B.at[flat].add(basis.reshape(-1))
    return B.reshape(K, num_nodes, num_nodes)


def build_basis_cat(B, inv_deg):
    """[K,N,N] -> [N, K*N] with 'mean' aggregation folded in (kernel-major
    columns, matching the XW scratch row layout).  No identity slab."""
    K, N, _ = B.shape
    Bs = B * inv_deg[None, :, None]
    return jnp.transpose(Bs, (1, 0, 2)).reshape(N, K * N)


def flatten_spline_weight(weight):
    """[K, Cin, Cout] -> [Cin, K*Cout]: pack kernels' out-channels along lanes."""
    K, cin, cout = weight.shape
    return jnp.transpose(weight, (1, 0, 2)).reshape(cin, K * cout)


def init_spline_conv_params(key, in_ch, out_ch, K):
    k1, k2, k3 = jax.random.split(key, 3)
    scale = 1.0 / jnp.sqrt(float(in_ch * K))
    weight = jax.random.uniform(k1, (K, in_ch, out_ch), jnp.float32, -scale, scale)
    root = jax.random.uniform(k2, (in_ch, out_ch), jnp.float32, -scale, scale)
    bias = jax.random.uniform(k3, (out_ch,), jnp.float32, -scale, scale)
    gamma = jnp.ones((out_ch,), jnp.float32)   # BatchNorm1d default affine init
    beta = jnp.zeros((out_ch,), jnp.float32)
    return weight, root, bias, gamma, beta


def residual_block(x, edge_index, edge_attr, params):
    """out = ELU(BN2(conv2(ELU(BN1(conv1(x))))) + BN_s(conv_s(x)))."""
    N, _ = x.shape
    w1, root1, bias1, gamma1, beta1 = params["left1"]
    w2, root2, bias2, gamma2, beta2 = params["left2"]
    ws, roots, biass, gammas, betas = params["shortcut"]
    K1, Cout = w1.shape[0], w1.shape[2]

    basis5, widx5 = spline_basis(edge_attr, (5, 5))   # SplineConv(kernel_size=5, dim=2)
    basis1, widx1 = spline_basis(edge_attr, (1, 1))   # shortcut SplineConv(kernel_size=1)
    B5 = build_dense_basis(edge_index, basis5, widx5, N, K1)
    B1 = build_dense_basis(edge_index, basis1, widx1, N, 1)

    deg = jnp.zeros((N,), jnp.float32).at[edge_index[1]].add(1.0)
    inv_deg = 1.0 / jnp.maximum(deg, 1.0)             # 'mean' aggregation

    b5cat = build_basis_cat(B5, inv_deg).astype(jnp.bfloat16)   # [N, K1*N]
    b1cat = build_basis_cat(B1, inv_deg).astype(jnp.bfloat16)   # [N, N]

    # group A: [conv1 kernels | shortcut kernel | conv1 root | shortcut root]
    wa = jnp.concatenate([flatten_spline_weight(w1), flatten_spline_weight(ws),
                          root1, roots], axis=1).astype(jnp.bfloat16)
    # group B: [conv2 kernels | conv2 root]
    wb = jnp.concatenate([flatten_spline_weight(w2), root2],
                         axis=1).astype(jnp.bfloat16)

    ep = jnp.stack([bias1, gamma1, beta1, bias2, gamma2, beta2,
                    biass, gammas, betas]).astype(jnp.float32)   # [9, Cout]

    return fused_residual_block(x.astype(jnp.bfloat16), wa, wb, b5cat, b1cat, ep,
                                n_nodes=N, c_out=Cout, k1=K1)


if __name__ == "__main__":
    key = jax.random.PRNGKey(0)
    N, E, Cin, Cout = 32, 96, 8, 16

    kx, ke, ka, kp = jax.random.split(key, 4)
    x = jax.random.normal(kx, (N, Cin), jnp.float32)
    edge_index = jax.random.randint(ke, (2, E), 0, N, dtype=jnp.int32)
    edge_attr = jax.random.uniform(ka, (E, 2), jnp.float32)   # pseudo coords in [0,1]

    k1, k2, k3 = jax.random.split(kp, 3)
    params = {
        "left1": init_spline_conv_params(k1, Cin, Cout, 25),
        "left2": init_spline_conv_params(k2, Cout, Cout, 25),
        "shortcut": init_spline_conv_params(k3, Cin, Cout, 1),
    }

    out = jax.jit(residual_block)(x, edge_index, edge_attr, params)
    jax.block_until_ready(out)
    assert out.shape == (N, Cout)
    assert bool(jnp.all(jnp.isfinite(out)))
    print("KERNEL_OK")
</pallas_src>

<mosaic_0001>
module attributes {stable_mosaic.version = 11 : i64} {
  func.func private @main(%arg0: i32) attributes {dimension_semantics = [#tpu.dimension_semantics<core_parallel>], iteration_bounds = array<i64: 2>, tpu.core_type = #tpu.core_type<sc_scalar_subcore>, window_params = []} {
    return
  }
}

module attributes {stable_mosaic.version = 11 : i64} {
  func.func private @main(%arg0: i32) attributes {dimension_semantics = [#tpu.dimension_semantics<core_parallel>], iteration_bounds = array<i64: 2>, tpu.core_type = #tpu.core_type<sc_scalar_subcore>, window_params = []} {
    return
  }
}

module attributes {stable_mosaic.version = 11 : i64} {
  func.func @kernel(%arg0: memref<32x8xbf16, #tpu.memory_space<vmem>>, %arg1: memref<8x448xbf16, #tpu.memory_space<vmem>>, %arg2: memref<16x416xbf16, #tpu.memory_space<vmem>>, %arg3: memref<32x800xbf16, #tpu.memory_space<vmem>>, %arg4: memref<32x32xbf16, #tpu.memory_space<vmem>>, %arg5: memref<9x16xf32, #tpu.memory_space<vmem>>, %arg6: memref<32x16xf32, #tpu.memory_space<vmem>>, %arg7: memref<800x16xbf16, #tpu.memory_space<vmem>>) attributes {dimension_semantics = [], scalar_prefetch = 0 : i64, scratch_operands = 1 : i64, tpu.core_type = #tpu.core_type<tc>} {
    %c0 = arith.constant 0 : index
    %c0_0 = arith.constant 0 : index
    %0 = vector.load %arg5[%c0, %c0_0] : memref<9x16xf32, #tpu.memory_space<vmem>>, vector<9x16xf32>
    %1 = vector.extract_strided_slice %0 {offsets = [0, 0], sizes = [1, 16], strides = [1, 1]} : vector<9x16xf32> to vector<1x16xf32>
    %2 = vector.extract_strided_slice %0 {offsets = [1, 0], sizes = [1, 16], strides = [1, 1]} : vector<9x16xf32> to vector<1x16xf32>
    %3 = vector.extract_strided_slice %0 {offsets = [2, 0], sizes = [1, 16], strides = [1, 1]} : vector<9x16xf32> to vector<1x16xf32>
    %4 = vector.extract_strided_slice %0 {offsets = [3, 0], sizes = [1, 16], strides = [1, 1]} : vector<9x16xf32> to vector<1x16xf32>
    %5 = vector.extract_strided_slice %0 {offsets = [4, 0], sizes = [1, 16], strides = [1, 1]} : vector<9x16xf32> to vector<1x16xf32>
    %6 = vector.extract_strided_slice %0 {offsets = [5, 0], sizes = [1, 16], strides = [1, 1]} : vector<9x16xf32> to vector<1x16xf32>
    %7 = vector.extract_strided_slice %0 {offsets = [6, 0], sizes = [1, 16], strides = [1, 1]} : vector<9x16xf32> to vector<1x16xf32>
    %8 = vector.extract_strided_slice %0 {offsets = [7, 0], sizes = [1, 16], strides = [1, 1]} : vector<9x16xf32> to vector<1x16xf32>
    %9 = vector.extract_strided_slice %0 {offsets = [8, 0], sizes = [1, 16], strides = [1, 1]} : vector<9x16xf32> to vector<1x16xf32>
    %c0_1 = arith.constant 0 : index
    %c0_2 = arith.constant 0 : index
    %10 = vector.load %arg0[%c0_1, %c0_2] : memref<32x8xbf16, #tpu.memory_space<vmem>>, vector<32x8xbf16>
    %c0_3 = arith.constant 0 : index
    %c0_4 = arith.constant 0 : index
    %11 = vector.load %arg1[%c0_3, %c0_4] : memref<8x448xbf16, #tpu.memory_space<vmem>>, vector<8x448xbf16>
    %cst = arith.constant dense<0.000000e+00> : vector<32x448xf32>
    %12 = tpu.matmul %10, %11, %cst {dimension_numbers = #tpu.dot_dimension_numbers<[1], [0], [0], [1], [0, 0, 1, 1], [], []>} : vector<32x8xbf16>, vector<8x448xbf16>, vector<32x448xf32> -> vector<32x448xf32>
    %13 = vector.extract_strided_slice %12 {offsets = [0, 0], sizes = [32, 16], strides = [1, 1]} : vector<32x448xf32> to vector<32x16xf32>
    %14 = arith.truncf %13 : vector<32x16xf32> to vector<32x16xbf16>
    %c0_5 = arith.constant 0 : index
    %c0_6 = arith.constant 0 : index
    %15 = vector.load %arg7[%c0_5, %c0_6] : memref<800x16xbf16, #tpu.memory_space<vmem>>, vector<32x16xbf16>
    tpu.vector_store %arg7[%c0_5, %c0_6], %14 {strides = array<i32>} : memref<800x16xbf16, #tpu.memory_space<vmem>>, vector<32x16xbf16>,
    %16 = vector.extract_strided_slice %12 {offsets = [0, 16], sizes = [32, 16], strides = [1, 1]} : vector<32x448xf32> to vector<32x16xf32>
    %17 = arith.truncf %16 : vector<32x16xf32> to vector<32x16xbf16>
    %c32 = arith.constant 32 : index
    %c0_7 = arith.constant 0 : index
    %18 = vector.load %arg7[%c32, %c0_7] : memref<800x16xbf16, #tpu.memory_space<vmem>>, vector<32x16xbf16>
    tpu.vector_store %arg7[%c32, %c0_7], %17 {strides = array<i32>} : memref<800x16xbf16, #tpu.memory_space<vmem>>, vector<32x16xbf16>,
    %19 = vector.extract_strided_slice %12 {offsets = [0, 32], sizes = [32, 16], strides = [1, 1]} : vector<32x448xf32> to vector<32x16xf32>
    %20 = arith.truncf %19 : vector<32x16xf32> to vector<32x16xbf16>
    %c64 = arith.constant 64 : index
    %c0_8 = arith.constant 0 : index
    %21 = vector.load %arg7[%c64, %c0_8] : memref<800x16xbf16, #tpu.memory_space<vmem>>, vector<32x16xbf16>
    tpu.vector_store %arg7[%c64, %c0_8], %20 {strides = array<i32>} : memref<800x16xbf16, #tpu.memory_space<vmem>>, vector<32x16xbf16>,
    %22 = vector.extract_strided_slice %12 {offsets = [0, 48], sizes = [32, 16], strides = [1, 1]} : vector<32x448xf32> to vector<32x16xf32>
    %23 = arith.truncf %22 : vector<32x16xf32> to vector<32x16xbf16>
    %c96 = arith.constant 96 : index
    %c0_9 = arith.constant 0 : index
    %24 = vector.load %arg7[%c96, %c0_9] : memref<800x16xbf16, #tpu.memory_space<vmem>>, vector<32x16xbf16>
    tpu.vector_store %arg7[%c96, %c0_9], %23 {strides = array<i32>} : memref<800x16xbf16, #tpu.memory_space<vmem>>, vector<32x16xbf16>,
    %25 = vector.extract_strided_slice %12 {offsets = [0, 64], sizes = [32, 16], strides = [1, 1]} : vector<32x448xf32> to vector<32x16xf32>
    %26 = arith.truncf %25 : vector<32x16xf32> to vector<32x16xbf16>
    %c128 = arith.constant 128 : index
    %c0_10 = arith.constant 0 : index
    %27 = vector.load %arg7[%c128, %c0_10] : memref<800x16xbf16, #tpu.memory_space<vmem>>, vector<32x16xbf16>
    tpu.vector_store %arg7[%c128, %c0_10], %26 {strides = array<i32>} : memref<800x16xbf16, #tpu.memory_space<vmem>>, vector<32x16xbf16>,
    %28 = vector.extract_strided_slice %12 {offsets = [0, 80], sizes = [32, 16], strides = [1, 1]} : vector<32x448xf32> to vector<32x16xf32>
    %29 = arith.truncf %28 : vector<32x16xf32> to vector<32x16xbf16>
    %c160 = arith.constant 160 : index
    %c0_11 = arith.constant 0 : index
    %30 = vector.load %arg7[%c160, %c0_11] : memref<800x16xbf16, #tpu.memory_space<vmem>>, vector<32x16xbf16>
    tpu.vector_store %arg7[%c160, %c0_11], %29 {strides = array<i32>} : memref<800x16xbf16, #tpu.memory_space<vmem>>, vector<32x16xbf16>,
    %31 = vector.extract_strided_slice %12 {offsets = [0, 96], sizes = [32, 16], strides = [1, 1]} : vector<32x448xf32> to vector<32x16xf32>
    %32 = arith.truncf %31 : vector<32x16xf32> to vector<32x16xbf16>
    %c192 = arith.constant 192 : index
    %c0_12 = arith.constant 0 : index
    %33 = vector.load %arg7[%c192, %c0_12] : memref<800x16xbf16, #tpu.memory_space<vmem>>, vector<32x16xbf16>
    tpu.vector_store %arg7[%c192, %c0_12], %32 {strides = array<i32>} : memref<800x16xbf16, #tpu.memory_space<vmem>>, vector<32x16xbf16>,
    %34 = vector.extract_strided_slice %12 {offsets = [0, 112], sizes = [32, 16], strides = [1, 1]} : vector<32x448xf32> to vector<32x16xf32>
    %35 = arith.truncf %34 : vector<32x16xf32> to vector<32x16xbf16>
    %c224 = arith.constant 224 : index
    %c0_13 = arith.constant 0 : index
    %36 = vector.load %arg7[%c224, %c0_13] : memref<800x16xbf16, #tpu.memory_space<vmem>>, vector<32x16xbf16>
    tpu.vector_store %arg7[%c224, %c0_13], %35 {strides = array<i32>} : memref<800x16xbf16, #tpu.memory_space<vmem>>, vector<32x16xbf16>,
    %37 = vector.extract_strided_slice %12 {offsets = [0, 128], sizes = [32, 16], strides = [1, 1]} : vector<32x448xf32> to vector<32x16xf32>
    %38 = arith.truncf %37 : vector<32x16xf32> to vector<32x16xbf16>
    %c256 = arith.constant 256 : index
    %c0_14 = arith.constant 0 : index
    %39 = vector.load %arg7[%c256, %c0_14] : memref<800x16xbf16, #tpu.memory_space<vmem>>, vector<32x16xbf16>
    tpu.vector_store %arg7[%c256, %c0_14], %38 {strides = array<i32>} : memref<800x16xbf16, #tpu.memory_space<vmem>>, vector<32x16xbf16>,
    %40 = vector.extract_strided_slice %12 {offsets = [0, 144], sizes = [32, 16], strides = [1, 1]} : vector<32x448xf32> to vector<32x16xf32>
    %41 = arith.truncf %40 : vector<32x16xf32> to vector<32x16xbf16>
    %c288 = arith.constant 288 : index
    %c0_15 = arith.constant 0 : index
    %42 = vector.load %arg7[%c288, %c0_15] : memref<800x16xbf16, #tpu.memory_space<vmem>>, vector<32x16xbf16>
    tpu.vector_store %arg7[%c288, %c0_15], %41 {strides = array<i32>} : memref<800x16xbf16, #tpu.memory_space<vmem>>, vector<32x16xbf16>,
    %43 = vector.extract_strided_slice %12 {offsets = [0, 160], sizes = [32, 16], strides = [1, 1]} : vector<32x448xf32> to vector<32x16xf32>
    %44 = arith.truncf %43 : vector<32x16xf32> to vector<32x16xbf16>
    %c320 = arith.constant 320 : index
    %c0_16 = arith.constant 0 : index
    %45 = vector.load %arg7[%c320, %c0_16] : memref<800x16xbf16, #tpu.memory_space<vmem>>, vector<32x16xbf16>
    tpu.vector_store %arg7[%c320, %c0_16], %44 {strides = array<i32>} : memref<800x16xbf16, #tpu.memory_space<vmem>>, vector<32x16xbf16>,
    %46 = vector.extract_strided_slice %12 {offsets = [0, 176], sizes = [32, 16], strides = [1, 1]} : vector<32x448xf32> to vector<32x16xf32>
    %47 = arith.truncf %46 : vector<32x16xf32> to vector<32x16xbf16>
    %c352 = arith.constant 352 : index
    %c0_17 = arith.constant 0 : index
    %48 = vector.load %arg7[%c352, %c0_17] : memref<800x16xbf16, #tpu.memory_space<vmem>>, vector<32x16xbf16>
    tpu.vector_store %arg7[%c352, %c0_17], %47 {strides = array<i32>} : memref<800x16xbf16, #tpu.memory_space<vmem>>, vector<32x16xbf16>,
    %49 = vector.extract_strided_slice %12 {offsets = [0, 192], sizes = [32, 16], strides = [1, 1]} : vector<32x448xf32> to vector<32x16xf32>
    %50 = arith.truncf %49 : vector<32x16xf32> to vector<32x16xbf16>
    %c384 = arith.constant 384 : index
    %c0_18 = arith.constant 0 : index
    %51 = vector.load %arg7[%c384, %c0_18] : memref<800x16xbf16, #tpu.memory_space<vmem>>, vector<32x16xbf16>
    tpu.vector_store %arg7[%c384, %c0_18], %50 {strides = array<i32>} : memref<800x16xbf16, #tpu.memory_space<vmem>>, vector<32x16xbf16>,
    %52 = vector.extract_strided_slice %12 {offsets = [0, 208], sizes = [32, 16], strides = [1, 1]} : vector<32x448xf32> to vector<32x16xf32>
    %53 = arith.truncf %52 : vector<32x16xf32> to vector<32x16xbf16>
    %c416 = arith.constant 416 : index
    %c0_19 = arith.constant 0 : index
    %54 = vector.load %arg7[%c416, %c0_19] : memref<800x16xbf16, #tpu.memory_space<vmem>>, vector<32x16xbf16>
    tpu.vector_store %arg7[%c416, %c0_19], %53 {strides = array<i32>} : memref<800x16xbf16, #tpu.memory_space<vmem>>, vector<32x16xbf16>,
    %55 = vector.extract_strided_slice %12 {offsets = [0, 224], sizes = [32, 16], strides = [1, 1]} : vector<32x448xf32> to vector<32x16xf32>
    %56 = arith.truncf %55 : vector<32x16xf32> to vector<32x16xbf16>
    %c448 = arith.constant 448 : index
    %c0_20 = arith.constant 0 : index
    %57 = vector.load %arg7[%c448, %c0_20] : memref<800x16xbf16, #tpu.memory_space<vmem>>, vector<32x16xbf16>
    tpu.vector_store %arg7[%c448, %c0_20], %56 {strides = array<i32>} : memref<800x16xbf16, #tpu.memory_space<vmem>>, vector<32x16xbf16>,
    %58 = vector.extract_strided_slice %12 {offsets = [0, 240], sizes = [32, 16], strides = [1, 1]} : vector<32x448xf32> to vector<32x16xf32>
    %59 = arith.truncf %58 : vector<32x16xf32> to vector<32x16xbf16>
    %c480 = arith.constant 480 : index
    %c0_21 = arith.constant 0 : index
    %60 = vector.load %arg7[%c480, %c0_21] : memref<800x16xbf16, #tpu.memory_space<vmem>>, vector<32x16xbf16>
    tpu.vector_store %arg7[%c480, %c0_21], %59 {strides = array<i32>} : memref<800x16xbf16, #tpu.memory_space<vmem>>, vector<32x16xbf16>,
    %61 = vector.extract_strided_slice %12 {offsets = [0, 256], sizes = [32, 16], strides = [1, 1]} : vector<32x448xf32> to vector<32x16xf32>
    %62 = arith.truncf %61 : vector<32x16xf32> to vector<32x16xbf16>
    %c512 = arith.constant 512 : index
    %c0_22 = arith.constant 0 : index
    %63 = vector.load %arg7[%c512, %c0_22] : memref<800x16xbf16, #tpu.memory_space<vmem>>, vector<32x16xbf16>
    tpu.vector_store %arg7[%c512, %c0_22], %62 {strides = array<i32>} : memref<800x16xbf16, #tpu.memory_space<vmem>>, vector<32x16xbf16>,
    %64 = vector.extract_strided_slice %12 {offsets = [0, 272], sizes = [32, 16], strides = [1, 1]} : vector<32x448xf32> to vector<32x16xf32>
    %65 = arith.truncf %64 : vector<32x16xf32> to vector<32x16xbf16>
    %c544 = arith.constant 544 : index
    %c0_23 = arith.constant 0 : index
    %66 = vector.load %arg7[%c544, %c0_23] : memref<800x16xbf16, #tpu.memory_space<vmem>>, vector<32x16xbf16>
    tpu.vector_store %arg7[%c544, %c0_23], %65 {strides = array<i32>} : memref<800x16xbf16, #tpu.memory_space<vmem>>, vector<32x16xbf16>,
    %67 = vector.extract_strided_slice %12 {offsets = [0, 288], sizes = [32, 16], strides = [1, 1]} : vector<32x448xf32> to vector<32x16xf32>
    %68 = arith.truncf %67 : vector<32x16xf32> to vector<32x16xbf16>
    %c576 = arith.constant 576 : index
    %c0_24 = arith.constant 0 : index
    %69 = vector.load %arg7[%c576, %c0_24] : memref<800x16xbf16, #tpu.memory_space<vmem>>, vector<32x16xbf16>
    tpu.vector_store %arg7[%c576, %c0_24], %68 {strides = array<i32>} : memref<800x16xbf16, #tpu.memory_space<vmem>>, vector<32x16xbf16>,
    %70 = vector.extract_strided_slice %12 {offsets = [0, 304], sizes = [32, 16], strides = [1, 1]} : vector<32x448xf32> to vector<32x16xf32>
    %71 = arith.truncf %70 : vector<32x16xf32> to vector<32x16xbf16>
    %c608 = arith.constant 608 : index
    %c0_25 = arith.constant 0 : index
    %72 = vector.load %arg7[%c608, %c0_25] : memref<800x16xbf16, #tpu.memory_space<vmem>>, vector<32x16xbf16>
    tpu.vector_store %arg7[%c608, %c0_25], %71 {strides = array<i32>} : memref<800x16xbf16, #tpu.memory_space<vmem>>, vector<32x16xbf16>,
    %73 = vector.extract_strided_slice %12 {offsets = [0, 320], sizes = [32, 16], strides = [1, 1]} : vector<32x448xf32> to vector<32x16xf32>
    %74 = arith.truncf %73 : vector<32x16xf32> to vector<32x16xbf16>
    %c640 = arith.constant 640 : index
    %c0_26 = arith.constant 0 : index
    %75 = vector.load %arg7[%c640, %c0_26] : memref<800x16xbf16, #tpu.memory_space<vmem>>, vector<32x16xbf16>
    tpu.vector_store %arg7[%c640, %c0_26], %74 {strides = array<i32>} : memref<800x16xbf16, #tpu.memory_space<vmem>>, vector<32x16xbf16>,
    %76 = vector.extract_strided_slice %12 {offsets = [0, 336], sizes = [32, 16], strides = [1, 1]} : vector<32x448xf32> to vector<32x16xf32>
    %77 = arith.truncf %76 : vector<32x16xf32> to vector<32x16xbf16>
    %c672 = arith.constant 672 : index
    %c0_27 = arith.constant 0 : index
    %78 = vector.load %arg7[%c672, %c0_27] : memref<800x16xbf16, #tpu.memory_space<vmem>>, vector<32x16xbf16>
    tpu.vector_store %arg7[%c672, %c0_27], %77 {strides = array<i32>} : memref<800x16xbf16, #tpu.memory_space<vmem>>, vector<32x16xbf16>,
    %79 = vector.extract_strided_slice %12 {offsets = [0, 352], sizes = [32, 16], strides = [1, 1]} : vector<32x448xf32> to vector<32x16xf32>
    %80 = arith.truncf %79 : vector<32x16xf32> to vector<32x16xbf16>
    %c704 = arith.constant 704 : index
    %c0_28 = arith.constant 0 : index
    %81 = vector.load %arg7[%c704, %c0_28] : memref<800x16xbf16, #tpu.memory_space<vmem>>, vector<32x16xbf16>
    tpu.vector_store %arg7[%c704, %c0_28], %80 {strides = array<i32>} : memref<800x16xbf16, #tpu.memory_space<vmem>>, vector<32x16xbf16>,
    %82 = vector.extract_strided_slice %12 {offsets = [0, 368], sizes = [32, 16], strides = [1, 1]} : vector<32x448xf32> to vector<32x16xf32>
    %83 = arith.truncf %82 : vector<32x16xf32> to vector<32x16xbf16>
    %c736 = arith.constant 736 : index
    %c0_29 = arith.constant 0 : index
    %84 = vector.load %arg7[%c736, %c0_29] : memref<800x16xbf16, #tpu.memory_space<vmem>>, vector<32x16xbf16>
    tpu.vector_store %arg7[%c736, %c0_29], %83 {strides = array<i32>} : memref<800x16xbf16, #tpu.memory_space<vmem>>, vector<32x16xbf16>,
    %85 = vector.extract_strided_slice %12 {offsets = [0, 384], sizes = [32, 16], strides = [1, 1]} : vector<32x448xf32> to vector<32x16xf32>
    %86 = arith.truncf %85 : vector<32x16xf32> to vector<32x16xbf16>
    %c768 = arith.constant 768 : index
    %c0_30 = arith.constant 0 : index
    %87 = vector.load %arg7[%c768, %c0_30] : memref<800x16xbf16, #tpu.memory_space<vmem>>, vector<32x16xbf16>
    tpu.vector_store %arg7[%c768, %c0_30], %86 {strides = array<i32>} : memref<800x16xbf16, #tpu.memory_space<vmem>>, vector<32x16xbf16>,
    %88 = vector.extract_strided_slice %12 {offsets = [0, 400], sizes = [32, 16], strides = [1, 1]} : vector<32x448xf32> to vector<32x16xf32>
    %89 = vector.extract_strided_slice %12 {offsets = [0, 416], sizes = [32, 16], strides = [1, 1]} : vector<32x448xf32> to vector<32x16xf32>
    %90 = vector.extract_strided_slice %12 {offsets = [0, 432], sizes = [32, 16], strides = [1, 1]} : vector<32x448xf32> to vector<32x16xf32>
    %c0_31 = arith.constant 0 : index
    %c0_32 = arith.constant 0 : index
    %91 = vector.load %arg4[%c0_31, %c0_32] : memref<32x32xbf16, #tpu.memory_space<vmem>>, vector<32x32xbf16>
    %92 = arith.truncf %88 : vector<32x16xf32> to vector<32x16xbf16>
    %cst_33 = arith.constant dense<0.000000e+00> : vector<32x16xf32>
    %93 = tpu.matmul %91, %92, %cst_33 {dimension_numbers = #tpu.dot_dimension_numbers<[1], [0], [0], [1], [0, 0, 1, 1], [], []>} : vector<32x32xbf16>, vector<32x16xbf16>, vector<32x16xf32> -> vector<32x16xf32>
    %94 = arith.addf %93, %90 : vector<32x16xf32>
    %95 = vector.broadcast %7 : vector<1x16xf32> to vector<32x16xf32>
    %96 = arith.addf %94, %95 : vector<32x16xf32>
    %cst_34 = arith.constant dense<0.000000e+00> : vector<16xf32>
    %97 = vector.multi_reduction <add>, %96, %cst_34 [0] : vector<32x16xf32> to vector<16xf32>
    %98 = vector.shape_cast %97 : vector<16xf32> to vector<1x16xf32>
    %cst_35 = arith.constant 3.200000e+01 : f32
    %99 = vector.broadcast %cst_35 : f32 to vector<1x16xf32>
    %100 = arith.divf %98, %99 : vector<1x16xf32>
    %101 = arith.mulf %96, %96 : vector<32x16xf32>
    %cst_36 = arith.constant dense<0.000000e+00> : vector<16xf32>
    %102 = vector.multi_reduction <add>, %101, %cst_36 [0] : vector<32x16xf32> to vector<16xf32>
    %103 = vector.shape_cast %102 : vector<16xf32> to vector<1x16xf32>
    %cst_37 = arith.constant 3.200000e+01 : f32
    %104 = vector.broadcast %cst_37 : f32 to vector<1x16xf32>
    %105 = arith.divf %103, %104 : vector<1x16xf32>
    %106 = arith.mulf %100, %100 : vector<1x16xf32>
    %107 = arith.subf %105, %106 : vector<1x16xf32>
    %cst_38 = arith.constant 0.000000e+00 : f32
    %108 = vector.broadcast %cst_38 : f32 to vector<1x16xf32>
    %109 = arith.maximumf %107, %108 : vector<1x16xf32>
    %cst_39 = arith.constant 9.99999974E-6 : f32
    %110 = vector.broadcast %cst_39 : f32 to vector<1x16xf32>
    %111 = arith.addf %109, %110 : vector<1x16xf32>
    %112 = math.rsqrt %111 : vector<1x16xf32>
    %113 = arith.mulf %8, %112 : vector<1x16xf32>
    %114 = vector.broadcast %113 : vector<1x16xf32> to vector<32x16xf32>
    %115 = arith.mulf %96, %114 : vector<32x16xf32>
    %116 = arith.mulf %100, %113 : vector<1x16xf32>
    %117 = arith.subf %9, %116 : vector<1x16xf32>
    %118 = vector.broadcast %117 : vector<1x16xf32> to vector<32x16xf32>
    %119 = arith.addf %115, %118 : vector<32x16xf32>
    %c0_40 = arith.constant 0 : index
    %c0_41 = arith.constant 0 : index
    %120 = vector.load %arg3[%c0_40, %c0_41] : memref<32x800xbf16, #tpu.memory_space<vmem>>, vector<32x800xbf16>
    %c0_42 = arith.constant 0 : index
    %c0_43 = arith.constant 0 : index
    %121 = vector.load %arg7[%c0_42, %c0_43] : memref<800x16xbf16, #tpu.memory_space<vmem>>, vector<800x16xbf16>
    %cst_44 = arith.constant dense<0.000000e+00> : vector<32x16xf32>
    %122 = tpu.matmul %120, %121, %cst_44 {dimension_numbers = #tpu.dot_dimension_numbers<[1], [0], [0], [1], [0, 0, 1, 1], [], []>} : vector<32x800xbf16>, vector<800x16xbf16>, vector<32x16xf32> -> vector<32x16xf32>
    %123 = arith.addf %122, %89 : vector<32x16xf32>
    %124 = vector.broadcast %1 : vector<1x16xf32> to vector<32x16xf32>
    %125 = arith.addf %123, %124 : vector<32x16xf32>
    %cst_45 = arith.constant dense<0.000000e+00> : vector<16xf32>
    %126 = vector.multi_reduction <add>, %125, %cst_45 [0] : vector<32x16xf32> to vector<16xf32>
    %127 = vector.shape_cast %126 : vector<16xf32> to vector<1x16xf32>
    %cst_46 = arith.constant 3.200000e+01 : f32
    %128 = vector.broadcast %cst_46 : f32 to vector<1x16xf32>
    %129 = arith.divf %127, %128 : vector<1x16xf32>
    %130 = arith.mulf %125, %125 : vector<32x16xf32>
    %cst_47 = arith.constant dense<0.000000e+00> : vector<16xf32>
    %131 = vector.multi_reduction <add>, %130, %cst_47 [0] : vector<32x16xf32> to vector<16xf32>
    %132 = vector.shape_cast %131 : vector<16xf32> to vector<1x16xf32>
    %cst_48 = arith.constant 3.200000e+01 : f32
    %133 = vector.broadcast %cst_48 : f32 to vector<1x16xf32>
    %134 = arith.divf %132, %133 : vector<1x16xf32>
    %135 = arith.mulf %129, %129 : vector<1x16xf32>
    %136 = arith.subf %134, %135 : vector<1x16xf32>
    %cst_49 = arith.constant 0.000000e+00 : f32
    %137 = vector.broadcast %cst_49 : f32 to vector<1x16xf32>
    %138 = arith.maximumf %136, %137 : vector<1x16xf32>
    %cst_50 = arith.constant 9.99999974E-6 : f32
    %139 = vector.broadcast %cst_50 : f32 to vector<1x16xf32>
    %140 = arith.addf %138, %139 : vector<1x16xf32>
    %141 = math.rsqrt %140 : vector<1x16xf32>
    %142 = arith.mulf %2, %141 : vector<1x16xf32>
    %143 = vector.broadcast %142 : vector<1x16xf32> to vector<32x16xf32>
    %144 = arith.mulf %125, %143 : vector<32x16xf32>
    %145 = arith.mulf %129, %142 : vector<1x16xf32>
    %146 = arith.subf %3, %145 : vector<1x16xf32>
    %147 = vector.broadcast %146 : vector<1x16xf32> to vector<32x16xf32>
    %148 = arith.addf %144, %147 : vector<32x16xf32>
    %cst_51 = arith.constant 0.000000e+00 : f32
    %149 = vector.broadcast %cst_51 : f32 to vector<32x16xf32>
    %150 = arith.cmpf ogt, %148, %149 : vector<32x16xf32>
    %cst_52 = arith.constant 0.000000e+00 : f32
    %151 = vector.broadcast %cst_52 : f32 to vector<32x16xf32>
    %152 = arith.minimumf %148, %151 : vector<32x16xf32>
    %153 = math.exp %152 : vector<32x16xf32>
    %cst_53 = arith.constant 1.000000e+00 : f32
    %154 = vector.broadcast %cst_53 : f32 to vector<32x16xf32>
    %155 = arith.subf %153, %154 : vector<32x16xf32>
    %156 = arith.select %150, %148, %155 : vector<32x16xi1>, vector<32x16xf32>
    %157 = arith.truncf %156 : vector<32x16xf32> to vector<32x16xbf16>
    %c0_54 = arith.constant 0 : index
    %c0_55 = arith.constant 0 : index
    %158 = vector.load %arg2[%c0_54, %c0_55] : memref<16x416xbf16, #tpu.memory_space<vmem>>, vector<16x416xbf16>
    %cst_56 = arith.constant dense<0.000000e+00> : vector<32x416xf32>
    %159 = tpu.matmul %157, %158, %cst_56 {dimension_numbers = #tpu.dot_dimension_numbers<[1], [0], [0], [1], [0, 0, 1, 1], [], []>} : vector<32x16xbf16>, vector<16x416xbf16>, vector<32x416xf32> -> vector<32x416xf32>
    %160 = vector.extract_strided_slice %159 {offsets = [0, 0], sizes = [32, 16], strides = [1, 1]} : vector<32x416xf32> to vector<32x16xf32>
    %161 = arith.truncf %160 : vector<32x16xf32> to vector<32x16xbf16>
    %c0_57 = arith.constant 0 : index
    %c0_58 = arith.constant 0 : index
    %162 = vector.load %arg7[%c0_57, %c0_58] : memref<800x16xbf16, #tpu.memory_space<vmem>>, vector<32x16xbf16>
    tpu.vector_store %arg7[%c0_57, %c0_58], %161 {strides = array<i32>} : memref<800x16xbf16, #tpu.memory_space<vmem>>, vector<32x16xbf16>,
    %163 = vector.extract_strided_slice %159 {offsets = [0, 16], sizes = [32, 16], strides = [1, 1]} : vector<32x416xf32> to vector<32x16xf32>
    %164 = arith.truncf %163 : vector<32x16xf32> to vector<32x16xbf16>
    %c32_59 = arith.constant 32 : index
    %c0_60 = arith.constant 0 : index
    %165 = vector.load %arg7[%c32_59, %c0_60] : memref<800x16xbf16, #tpu.memory_space<vmem>>, vector<32x16xbf16>
    tpu.vector_store %arg7[%c32_59, %c0_60], %164 {strides = array<i32>} : memref<800x16xbf16, #tpu.memory_space<vmem>>, vector<32x16xbf16>,
    %166 = vector.extract_strided_slice %159 {offsets = [0, 32], sizes = [32, 16], strides = [1, 1]} : vector<32x416xf32> to vector<32x16xf32>
    %167 = arith.truncf %166 : vector<32x16xf32> to vector<32x16xbf16>
    %c64_61 = arith.constant 64 : index
    %c0_62 = arith.constant 0 : index
    %168 = vector.load %arg7[%c64_61, %c0_62] : memref<800x16xbf16, #tpu.memory_space<vmem>>, vector<32x16xbf16>
    tpu.vector_store %arg7[%c64_61, %c0_62], %167 {strides = array<i32>} : memref<800x16xbf16, #tpu.memory_space<vmem>>, vector<32x16xbf16>,
    %169 = vector.extract_strided_slice %159 {offsets = [0, 48], sizes = [32, 16], strides = [1, 1]} : vector<32x416xf32> to vector<32x16xf32>
    %170 = arith.truncf %169 : vector<32x16xf32> to vector<32x16xbf16>
    %c96_63 = arith.constant 96 : index
    %c0_64 = arith.constant 0 : index
    %171 = vector.load %arg7[%c96_63, %c0_64] : memref<800x16xbf16, #tpu.memory_space<vmem>>, vector<32x16xbf16>
    tpu.vector_store %arg7[%c96_63, %c0_64], %170 {strides = array<i32>} : memref<800x16xbf16, #tpu.memory_space<vmem>>, vector<32x16xbf16>,
    %172 = vector.extract_strided_slice %159 {offsets = [0, 64], sizes = [32, 16], strides = [1, 1]} : vector<32x416xf32> to vector<32x16xf32>
    %173 = arith.truncf %172 : vector<32x16xf32> to vector<32x16xbf16>
    %c128_65 = arith.constant 128 : index
    %c0_66 = arith.constant 0 : index
    %174 = vector.load %arg7[%c128_65, %c0_66] : memref<800x16xbf16, #tpu.memory_space<vmem>>, vector<32x16xbf16>
    tpu.vector_store %arg7[%c128_65, %c0_66], %173 {strides = array<i32>} : memref<800x16xbf16, #tpu.memory_space<vmem>>, vector<32x16xbf16>,
    %175 = vector.extract_strided_slice %159 {offsets = [0, 80], sizes = [32, 16], strides = [1, 1]} : vector<32x416xf32> to vector<32x16xf32>
    %176 = arith.truncf %175 : vector<32x16xf32> to vector<32x16xbf16>
    %c160_67 = arith.constant 160 : index
    %c0_68 = arith.constant 0 : index
    %177 = vector.load %arg7[%c160_67, %c0_68] : memref<800x16xbf16, #tpu.memory_space<vmem>>, vector<32x16xbf16>
    tpu.vector_store %arg7[%c160_67, %c0_68], %176 {strides = array<i32>} : memref<800x16xbf16, #tpu.memory_space<vmem>>, vector<32x16xbf16>,
    %178 = vector.extract_strided_slice %159 {offsets = [0, 96], sizes = [32, 16], strides = [1, 1]} : vector<32x416xf32> to vector<32x16xf32>
    %179 = arith.truncf %178 : vector<32x16xf32> to vector<32x16xbf16>
    %c192_69 = arith.constant 192 : index
    %c0_70 = arith.constant 0 : index
    %180 = vector.load %arg7[%c192_69, %c0_70] : memref<800x16xbf16, #tpu.memory_space<vmem>>, vector<32x16xbf16>
    tpu.vector_store %arg7[%c192_69, %c0_70], %179 {strides = array<i32>} : memref<800x16xbf16, #tpu.memory_space<vmem>>, vector<32x16xbf16>,
    %181 = vector.extract_strided_slice %159 {offsets = [0, 112], sizes = [32, 16], strides = [1, 1]} : vector<32x416xf32> to vector<32x16xf32>
    %182 = arith.truncf %181 : vector<32x16xf32> to vector<32x16xbf16>
    %c224_71 = arith.constant 224 : index
    %c0_72 = arith.constant 0 : index
    %183 = vector.load %arg7[%c224_71, %c0_72] : memref<800x16xbf16, #tpu.memory_space<vmem>>, vector<32x16xbf16>
    tpu.vector_store %arg7[%c224_71, %c0_72], %182 {strides = array<i32>} : memref<800x16xbf16, #tpu.memory_space<vmem>>, vector<32x16xbf16>,
    %184 = vector.extract_strided_slice %159 {offsets = [0, 128], sizes = [32, 16], strides = [1, 1]} : vector<32x416xf32> to vector<32x16xf32>
    %185 = arith.truncf %184 : vector<32x16xf32> to vector<32x16xbf16>
    %c256_73 = arith.constant 256 : index
    %c0_74 = arith.constant 0 : index
    %186 = vector.load %arg7[%c256_73, %c0_74] : memref<800x16xbf16, #tpu.memory_space<vmem>>, vector<32x16xbf16>
    tpu.vector_store %arg7[%c256_73, %c0_74], %185 {strides = array<i32>} : memref<800x16xbf16, #tpu.memory_space<vmem>>, vector<32x16xbf16>,
    %187 = vector.extract_strided_slice %159 {offsets = [0, 144], sizes = [32, 16], strides = [1, 1]} : vector<32x416xf32> to vector<32x16xf32>
    %188 = arith.truncf %187 : vector<32x16xf32> to vector<32x16xbf16>
    %c288_75 = arith.constant 288 : index
    %c0_76 = arith.constant 0 : index
    %189 = vector.load %arg7[%c288_75, %c0_76] : memref<800x16xbf16, #tpu.memory_space<vmem>>, vector<32x16xbf16>
    tpu.vector_store %arg7[%c288_75, %c0_76], %188 {strides = array<i32>} : memref<800x16xbf16, #tpu.memory_space<vmem>>, vector<32x16xbf16>,
    %190 = vector.extract_strided_slice %159 {offsets = [0, 160], sizes = [32, 16], strides = [1, 1]} : vector<32x416xf32> to vector<32x16xf32>
    %191 = arith.truncf %190 : vector<32x16xf32> to vector<32x16xbf16>
    %c320_77 = arith.constant 320 : index
    %c0_78 = arith.constant 0 : index
    %192 = vector.load %arg7[%c320_77, %c0_78] : memref<800x16xbf16, #tpu.memory_space<vmem>>, vector<32x16xbf16>
    tpu.vector_store %arg7[%c320_77, %c0_78], %191 {strides = array<i32>} : memref<800x16xbf16, #tpu.memory_space<vmem>>, vector<32x16xbf16>,
    %193 = vector.extract_strided_slice %159 {offsets = [0, 176], sizes = [32, 16], strides = [1, 1]} : vector<32x416xf32> to vector<32x16xf32>
    %194 = arith.truncf %193 : vector<32x16xf32> to vector<32x16xbf16>
    %c352_79 = arith.constant 352 : index
    %c0_80 = arith.constant 0 : index
    %195 = vector.load %arg7[%c352_79, %c0_80] : memref<800x16xbf16, #tpu.memory_space<vmem>>, vector<32x16xbf16>
    tpu.vector_store %arg7[%c352_79, %c0_80], %194 {strides = array<i32>} : memref<800x16xbf16, #tpu.memory_space<vmem>>, vector<32x16xbf16>,
    %196 = vector.extract_strided_slice %159 {offsets = [0, 192], sizes = [32, 16], strides = [1, 1]} : vector<32x416xf32> to vector<32x16xf32>
    %197 = arith.truncf %196 : vector<32x16xf32> to vector<32x16xbf16>
    %c384_81 = arith.constant 384 : index
    %c0_82 = arith.constant 0 : index
    %198 = vector.load %arg7[%c384_81, %c0_82] : memref<800x16xbf16, #tpu.memory_space<vmem>>, vector<32x16xbf16>
    tpu.vector_store %arg7[%c384_81, %c0_82], %197 {strides = array<i32>} : memref<800x16xbf16, #tpu.memory_space<vmem>>, vector<32x16xbf16>,
    %199 = vector.extract_strided_slice %159 {offsets = [0, 208], sizes = [32, 16], strides = [1, 1]} : vector<32x416xf32> to vector<32x16xf32>
    %200 = arith.truncf %199 : vector<32x16xf32> to vector<32x16xbf16>
    %c416_83 = arith.constant 416 : index
    %c0_84 = arith.constant 0 : index
    %201 = vector.load %arg7[%c416_83, %c0_84] : memref<800x16xbf16, #tpu.memory_space<vmem>>, vector<32x16xbf16>
    tpu.vector_store %arg7[%c416_83, %c0_84], %200 {strides = array<i32>} : memref<800x16xbf16, #tpu.memory_space<vmem>>, vector<32x16xbf16>,
    %202 = vector.extract_strided_slice %159 {offsets = [0, 224], sizes = [32, 16], strides = [1, 1]} : vector<32x416xf32> to vector<32x16xf32>
    %203 = arith.truncf %202 : vector<32x16xf32> to vector<32x16xbf16>
    %c448_85 = arith.constant 448 : index
    %c0_86 = arith.constant 0 : index
    %204 = vector.load %arg7[%c448_85, %c0_86] : memref<800x16xbf16, #tpu.memory_space<vmem>>, vector<32x16xbf16>
    tpu.vector_store %arg7[%c448_85, %c0_86], %203 {strides = array<i32>} : memref<800x16xbf16, #tpu.memory_space<vmem>>, vector<32x16xbf16>,
    %205 = vector.extract_strided_slice %159 {offsets = [0, 240], sizes = [32, 16], strides = [1, 1]} : vector<32x416xf32> to vector<32x16xf32>
    %206 = arith.truncf %205 : vector<32x16xf32> to vector<32x16xbf16>
    %c480_87 = arith.constant 480 : index
    %c0_88 = arith.constant 0 : index
    %207 = vector.load %arg7[%c480_87, %c0_88] : memref<800x16xbf16, #tpu.memory_space<vmem>>, vector<32x16xbf16>
    tpu.vector_store %arg7[%c480_87, %c0_88], %206 {strides = array<i32>} : memref<800x16xbf16, #tpu.memory_space<vmem>>, vector<32x16xbf16>,
    %208 = vector.extract_strided_slice %159 {offsets = [0, 256], sizes = [32, 16], strides = [1, 1]} : vector<32x416xf32> to vector<32x16xf32>
    %209 = arith.truncf %208 : vector<32x16xf32> to vector<32x16xbf16>
    %c512_89 = arith.constant 512 : index
    %c0_90 = arith.constant 0 : index
    %210 = vector.load %arg7[%c512_89, %c0_90] : memref<800x16xbf16, #tpu.memory_space<vmem>>, vector<32x16xbf16>
    tpu.vector_store %arg7[%c512_89, %c0_90], %209 {strides = array<i32>} : memref<800x16xbf16, #tpu.memory_space<vmem>>, vector<32x16xbf16>,
    %211 = vector.extract_strided_slice %159 {offsets = [0, 272], sizes = [32, 16], strides = [1, 1]} : vector<32x416xf32> to vector<32x16xf32>
    %212 = arith.truncf %211 : vector<32x16xf32> to vector<32x16xbf16>
    %c544_91 = arith.constant 544 : index
    %c0_92 = arith.constant 0 : index
    %213 = vector.load %arg7[%c544_91, %c0_92] : memref<800x16xbf16, #tpu.memory_space<vmem>>, vector<32x16xbf16>
    tpu.vector_store %arg7[%c544_91, %c0_92], %212 {strides = array<i32>} : memref<800x16xbf16, #tpu.memory_space<vmem>>, vector<32x16xbf16>,
    %214 = vector.extract_strided_slice %159 {offsets = [0, 288], sizes = [32, 16], strides = [1, 1]} : vector<32x416xf32> to vector<32x16xf32>
    %215 = arith.truncf %214 : vector<32x16xf32> to vector<32x16xbf16>
    %c576_93 = arith.constant 576 : index
    %c0_94 = arith.constant 0 : index
    %216 = vector.load %arg7[%c576_93, %c0_94] : memref<800x16xbf16, #tpu.memory_space<vmem>>, vector<32x16xbf16>
    tpu.vector_store %arg7[%c576_93, %c0_94], %215 {strides = array<i32>} : memref<800x16xbf16, #tpu.memory_space<vmem>>, vector<32x16xbf16>,
    %217 = vector.extract_strided_slice %159 {offsets = [0, 304], sizes = [32, 16], strides = [1, 1]} : vector<32x416xf32> to vector<32x16xf32>
    %218 = arith.truncf %217 : vector<32x16xf32> to vector<32x16xbf16>
    %c608_95 = arith.constant 608 : index
    %c0_96 = arith.constant 0 : index
    %219 = vector.load %arg7[%c608_95, %c0_96] : memref<800x16xbf16, #tpu.memory_space<vmem>>, vector<32x16xbf16>
    tpu.vector_store %arg7[%c608_95, %c0_96], %218 {strides = array<i32>} : memref<800x16xbf16, #tpu.memory_space<vmem>>, vector<32x16xbf16>,
    %220 = vector.extract_strided_slice %159 {offsets = [0, 320], sizes = [32, 16], strides = [1, 1]} : vector<32x416xf32> to vector<32x16xf32>
    %221 = arith.truncf %220 : vector<32x16xf32> to vector<32x16xbf16>
    %c640_97 = arith.constant 640 : index
    %c0_98 = arith.constant 0 : index
    %222 = vector.load %arg7[%c640_97, %c0_98] : memref<800x16xbf16, #tpu.memory_space<vmem>>, vector<32x16xbf16>
    tpu.vector_store %arg7[%c640_97, %c0_98], %221 {strides = array<i32>} : memref<800x16xbf16, #tpu.memory_space<vmem>>, vector<32x16xbf16>,
    %223 = vector.extract_strided_slice %159 {offsets = [0, 336], sizes = [32, 16], strides = [1, 1]} : vector<32x416xf32> to vector<32x16xf32>
    %224 = arith.truncf %223 : vector<32x16xf32> to vector<32x16xbf16>
    %c672_99 = arith.constant 672 : index
    %c0_100 = arith.constant 0 : index
    %225 = vector.load %arg7[%c672_99, %c0_100] : memref<800x16xbf16, #tpu.memory_space<vmem>>, vector<32x16xbf16>
    tpu.vector_store %arg7[%c672_99, %c0_100], %224 {strides = array<i32>} : memref<800x16xbf16, #tpu.memory_space<vmem>>, vector<32x16xbf16>,
    %226 = vector.extract_strided_slice %159 {offsets = [0, 352], sizes = [32, 16], strides = [1, 1]} : vector<32x416xf32> to vector<32x16xf32>
    %227 = arith.truncf %226 : vector<32x16xf32> to vector<32x16xbf16>
    %c704_101 = arith.constant 704 : index
    %c0_102 = arith.constant 0 : index
    %228 = vector.load %arg7[%c704_101, %c0_102] : memref<800x16xbf16, #tpu.memory_space<vmem>>, vector<32x16xbf16>
    tpu.vector_store %arg7[%c704_101, %c0_102], %227 {strides = array<i32>} : memref<800x16xbf16, #tpu.memory_space<vmem>>, vector<32x16xbf16>,
    %229 = vector.extract_strided_slice %159 {offsets = [0, 368], sizes = [32, 16], strides = [1, 1]} : vector<32x416xf32> to vector<32x16xf32>
    %230 = arith.truncf %229 : vector<32x16xf32> to vector<32x16xbf16>
    %c736_103 = arith.constant 736 : index
    %c0_104 = arith.constant 0 : index
    %231 = vector.load %arg7[%c736_103, %c0_104] : memref<800x16xbf16, #tpu.memory_space<vmem>>, vector<32x16xbf16>
    tpu.vector_store %arg7[%c736_103, %c0_104], %230 {strides = array<i32>} : memref<800x16xbf16, #tpu.memory_space<vmem>>, vector<32x16xbf16>,
    %232 = vector.extract_strided_slice %159 {offsets = [0, 384], sizes = [32, 16], strides = [1, 1]} : vector<32x416xf32> to vector<32x16xf32>
    %233 = arith.truncf %232 : vector<32x16xf32> to vector<32x16xbf16>
    %c768_105 = arith.constant 768 : index
    %c0_106 = arith.constant 0 : index
    %234 = vector.load %arg7[%c768_105, %c0_106] : memref<800x16xbf16, #tpu.memory_space<vmem>>, vector<32x16xbf16>
    tpu.vector_store %arg7[%c768_105, %c0_106], %233 {strides = array<i32>} : memref<800x16xbf16, #tpu.memory_space<vmem>>, vector<32x16xbf16>,
    %235 = vector.extract_strided_slice %159 {offsets = [0, 400], sizes = [32, 16], strides = [1, 1]} : vector<32x416xf32> to vector<32x16xf32>
    %c0_107 = arith.constant 0 : index
    %c0_108 = arith.constant 0 : index
    %236 = vector.load %arg3[%c0_107, %c0_108] : memref<32x800xbf16, #tpu.memory_space<vmem>>, vector<32x800xbf16>
    %c0_109 = arith.constant 0 : index
    %c0_110 = arith.constant 0 : index
    %237 = vector.load %arg7[%c0_109, %c0_110] : memref<800x16xbf16, #tpu.memory_space<vmem>>, vector<800x16xbf16>
    %cst_111 = arith.constant dense<0.000000e+00> : vector<32x16xf32>
    %238 = tpu.matmul %236, %237, %cst_111 {dimension_numbers = #tpu.dot_dimension_numbers<[1], [0], [0], [1], [0, 0, 1, 1], [], []>} : vector<32x800xbf16>, vector<800x16xbf16>, vector<32x16xf32> -> vector<32x16xf32>
    %239 = arith.addf %238, %235 : vector<32x16xf32>
    %240 = vector.broadcast %4 : vector<1x16xf32> to vector<32x16xf32>
    %241 = arith.addf %239, %240 : vector<32x16xf32>
    %cst_112 = arith.constant dense<0.000000e+00> : vector<16xf32>
    %242 = vector.multi_reduction <add>, %241, %cst_112 [0] : vector<32x16xf32> to vector<16xf32>
    %243 = vector.shape_cast %242 : vector<16xf32> to vector<1x16xf32>
    %cst_113 = arith.constant 3.200000e+01 : f32
    %244 = vector.broadcast %cst_113 : f32 to vector<1x16xf32>
    %245 = arith.divf %243, %244 : vector<1x16xf32>
    %246 = arith.mulf %241, %241 : vector<32x16xf32>
    %cst_114 = arith.constant dense<0.000000e+00> : vector<16xf32>
    %247 = vector.multi_reduction <add>, %246, %cst_114 [0] : vector<32x16xf32> to vector<16xf32>
    %248 = vector.shape_cast %247 : vector<16xf32> to vector<1x16xf32>
    %cst_115 = arith.constant 3.200000e+01 : f32
    %249 = vector.broadcast %cst_115 : f32 to vector<1x16xf32>
    %250 = arith.divf %248, %249 : vector<1x16xf32>
    %251 = arith.mulf %245, %245 : vector<1x16xf32>
    %252 = arith.subf %250, %251 : vector<1x16xf32>
    %cst_116 = arith.constant 0.000000e+00 : f32
    %253 = vector.broadcast %cst_116 : f32 to vector<1x16xf32>
    %254 = arith.maximumf %252, %253 : vector<1x16xf32>
    %cst_117 = arith.constant 9.99999974E-6 : f32
    %255 = vector.broadcast %cst_117 : f32 to vector<1x16xf32>
    %256 = arith.addf %254, %255 : vector<1x16xf32>
    %257 = math.rsqrt %256 : vector<1x16xf32>
    %258 = arith.mulf %5, %257 : vector<1x16xf32>
    %259 = vector.broadcast %258 : vector<1x16xf32> to vector<32x16xf32>
    %260 = arith.mulf %241, %259 : vector<32x16xf32>
    %261 = arith.mulf %245, %258 : vector<1x16xf32>
    %262 = arith.subf %6, %261 : vector<1x16xf32>
    %263 = vector.broadcast %262 : vector<1x16xf32> to vector<32x16xf32>
    %264 = arith.addf %260, %263 : vector<32x16xf32>
    %265 = arith.addf %264, %119 : vector<32x16xf32>
    %cst_118 = arith.constant 0.000000e+00 : f32
    %266 = vector.broadcast %cst_118 : f32 to vector<32x16xf32>
    %267 = arith.cmpf ogt, %265, %266 : vector<32x16xf32>
    %cst_119 = arith.constant 0.000000e+00 : f32
    %268 = vector.broadcast %cst_119 : f32 to vector<32x16xf32>
    %269 = arith.minimumf %265, %268 : vector<32x16xf32>
    %270 = math.exp %269 : vector<32x16xf32>
    %cst_120 = arith.constant 1.000000e+00 : f32
    %271 = vector.broadcast %cst_120 : f32 to vector<32x16xf32>
    %272 = arith.subf %270, %271 : vector<32x16xf32>
    %273 = arith.select %267, %265, %272 : vector<32x16xi1>, vector<32x16xf32>
    %c0_121 = arith.constant 0 : index
    %c0_122 = arith.constant 0 : index
    %274 = vector.load %arg6[%c0_121, %c0_122] : memref<32x16xf32, #tpu.memory_space<vmem>>, vector<32x16xf32>
    tpu.vector_store %arg6[%c0_121, %c0_122], %273 {strides = array<i32>} : memref<32x16xf32, #tpu.memory_space<vmem>>, vector<32x16xf32>,
    return
  }
}

</mosaic_0001>

<bundles_post_ra>
// kernel: residual_block.1
= control target key start
LH: loop header
LB: loop body
LE: loop exit
PB: predicated region body
PF: predicated region fallthrough
CT: control target
= control target key end

     0   :  { %vm59_vm0 = vcmask 1043456   ;;  %v2102_v2 = vmov 0   ;;  %vm52_vm1 = vcmask 64512   ;;  %vm180_vm2 = vcmask 130048   ;;  %s2104_s28 = smov 64   ;;  %s2105_s29 = smov 112   ;;  %s2660_s1 = inlined_call_operand.vmem [shape: bf16[8,448], index: 1, kind: input, shape index: {}]   ;;  %s2661_s0 = inlined_call_operand.vmem [shape: bf16[32,8], index: 0, kind: input, shape index: {}]   ;;  %s2662_s3 = inlined_call_operand.vmem [shape: bf16[32,800], index: 3, kind: input, shape index: {}]   ;;  %s2663_s4 = inlined_call_operand.vmem [shape: bf16[32,32], index: 4, kind: input, shape index: {}]   ;;  %s2664_s2 = inlined_call_operand.vmem [shape: bf16[16,416], index: 2, kind: input, shape index: {}]   ;;  %s2665_s5 = inlined_call_operand.vmem [shape: f32[9,16], index: 5, kind: input, shape index: {}]   ;;  %s2666_s6 = inlined_call_operand.vmem [shape: f32[32,16], index: 6, kind: output, shape index: {}]  }
   0x1   :  { %v30_v0 = vld [vmem:[%s2660_s1] sm:$0xff]  ;;  %v31_v1 = vld [vmem:[%s2660_s1 + $0x8] sm:$0xff]  ;;  %104 = vmatprep.mubr.bf16.mxu0 %v2102_v2  ;;  %114 = vmatprep.mubr.bf16.mxu1 %v2102_v2  ;;  %s2106_s30 = smov 96   ;;  %s2107_s7 = smov 32   ;;  %vm407_vm3 = vcmask 261120  }
   0x2   :  { %v1760_v3 = vcombine.high %v30_v0, %v30_v0  ;;  %v1762_v4 = vcombine.high %v31_v1, %v31_v1  ;;  %v1759_v5 = vcombine.low %v30_v0, %v30_v0  ;;  %v1761_v6 = vcombine.low %v31_v1, %v31_v1  ;;  %v2038_v8 = vld [vmem:[%s2661_s0] sm:$0xff]   ;;  %v2039_v9 = vld [vmem:[%s2661_s0 + $0x8] sm:$0xff]   ;;  %s2103_s0 = smov 48   ;;  %s2108_s8 = smov 80  }
   0x3   :  { %s2109_s9 = smov 16   ;;  %v2043_v35 = vld [vmem:[%s2662_s3 + $0x4] ss:$28 sps:$4 sm:$0xff]  }
   0x4   :  { %1763 = vmatprep.subr.msk.bf16.mxu0 %vm59_vm0, %v1760_v3  ;;  %2025 = vmatprep.subr.msk.bf16.mxu1 %vm59_vm0, %v1760_v3  ;;  %v61_v7 = vsel %vm59_vm0, %v1759_v5, 0  ;;  %v67_v10 = vsel %vm59_vm0, %v1761_v6, 0  ;;  %v2046_v36 = vld [vmem:[%s2663_s4] sm:$0xff]  }
   0x5   :  { %73 = vmatpush1.bf16.msra.mxu0 %v61_v7  ;;  %2026 = vmatpush1.bf16.msra.mxu1 %v61_v7 }
   0x6   :  { %1766 = vmatprep.subr.msk.bf16.mxu1 %vm59_vm0, %v1762_v4 }
   0x8   :  { %1764 = vmatmul.mubr.msk.bf16.vlgmr.msra.gmra.mrb[0].mxu0 %vm52_vm1, %v2038_v8  ;;  %1765 = vmatmul.mubr.msk.bf16.vlgmr.msra.gmra.mrb[0].mxu1 %vm52_vm1, %v2039_v9 }
   0x9   :  { %126 = vmatpush1.bf16.msra.mxu1 %v67_v10  ;;  %157 = vmatprep.mubr.bf16.mxu1 %v2102_v2  ;;  %v2041_v10 = vld [vmem:[%s2662_s3] ss:$28 sps:$4 sm:$0xff]  }
   0xa   :  { %2005 = vmatprep.mubr.msk.bf16.mxu0 %vm407_vm3, %v2046_v36 }
  0x10   :  { %1767 = vmatmul.mubr.msk.bf16.vlgmr.msra.gmra.mrb[4].mxu1 %vm52_vm1, %v2038_v8 }
  0x11   :  { %167 = vmatprep.mubr.bf16.mxu1 %v2102_v2 }
  0x18   :  { %1768 = vmatmul.mubr.msk.bf16.gmra.mrb[8].mxu1 %vm52_vm1, %v2039_v9 }
  0x19   :  { %717 = vmatprep.mubr.bf16.mxu1 %v2043_v35  ;;  %v2312_v35 = vld [vmem:[%s2662_s3 + $0xc] ss:$28 sps:$4 sm:$0xff]  }
  0xdb   :  { %v106_v11 = vpop.f32.mrb[0].mxu0  ;;  %v116_v12 = vpop.f32.mrb[0].mxu1 }
  0xdc   :  { %v108_v13 = vpop.f32.mrb[1].mxu0  ;;  %v118_v14 = vpop.f32.mrb[1].mxu1 }
  0xdd   :  { %v110_v15 = vpop.f32.mrb[2].mxu0  ;;  %v120_v16 = vpop.f32.mrb[2].mxu1 }
  0xde   :  { %v178_v17 = vpack.c.bf16 %v110_v15, %v106_v11  ;;  %v112_v18 = vpop.f32.mrb[3].mxu0  ;;  %v179_v19 = vpack.c.bf16 %v120_v16, %v116_v12  ;;  %v122_v20 = vpop.f32.mrb[3].mxu1  ;;  %v2044_v11 = vld [vmem:[%s2662_s3 + $0x3c] ss:$28 sps:$4 sm:$0xff]  }
  0xdf   :  { %v2166_v21 = vpack.c.bf16 %v112_v18, %v108_v13  ;;  %v2168_v22 = vpack.c.bf16 %v122_v20, %v118_v14  ;;  %v539_v14 = vld [vmem:[%s2662_s3 + $0x38] sm:$0xff] }
  0xe0   :  { %181 = vst.msk [vmem:[#allocation2] sm:$0xff] %vm180_vm2, %v178_v17  ;;  %182 = vst.msk [vmem:[#allocation2 + $0x8] sm:$0xff] %vm180_vm2, %v179_v19  ;;  %217 = vrot.lane.b32.xlu1 %v178_v17, %s2103_s0  ;;  %209 = vrot.lane.b32.xlu0 %v178_v17, %s2104_s28  ;;  %v543_v15 = vld [vmem:[%s2662_s3 + $0x54] sm:$0xff] }
  0xe1   :  { %243 = vst.msk [vmem:[#allocation2 + $0x80] sm:$0xff] %vm180_vm2, %v2166_v21  ;;  %244 = vst.msk [vmem:[#allocation2 + $0x88] sm:$0xff] %vm180_vm2, %v2168_v22  ;;  %v1780_v18 = vcombine.low %v539_v14, %v543_v15 }
  0xe3   :  { %v159_v23 = vpop.f32.mrb[4].mxu1 }
  0xe4   :  { %185 = vrot.lane.b32.xlu1 %v178_v17, %s2105_s29  ;;  %211 = vrot.lane.b32.xlu0 %v179_v19, %s2104_s28  ;;  %v2180_v24 = vpop.f32.mrb[5].mxu1 }
  0xe5   :  { %v163_v25 = vpop.f32.mrb[6].mxu1 }
  0xe6   :  { %v303_v26 = vpack.c.bf16 %v163_v25, %v159_v23  ;;  %v2182_v27 = vpop.f32.mrb[7].mxu1 }
  0xe7   :  { %v365_v28 = vpack.c.bf16 %v2182_v27, %v2180_v24  ;;  %v547_v44 = vld [vmem:[#allocation2] sm:$0xff]  ;;  %v548_v48 = vld [vmem:[#allocation2 + $0x8] sm:$0xff] }
  0xe8   :  { %187 = vrot.lane.b32.xlu1 %v179_v19, %s2105_s29  ;;  %219 = vrot.lane.b32.xlu0 %v179_v19, %s2103_s0  ;;  %305 = vst.msk [vmem:[#allocation2 + $0x100] sm:$0xff] %vm180_vm2, %v303_v26  ;;  %v563_v36 = vld [vmem:[#allocation2 + $0x80] sm:$0xff] }
  0xe9   :  { %367 = vst.msk [vmem:[#allocation2 + $0x180] sm:$0xff] %vm180_vm2, %v365_v28 }
  0xeb   :  { %v169_v29 = vpop.f32.mrb[8].mxu1 }
  0xec   :  { %193 = vrot.lane.b32.xlu1 %v178_v17, %s2106_s30  ;;  %225 = vrot.lane.b32.xlu0 %v178_v17, %s2107_s7  ;;  %v2192_v30 = vpop.f32.mrb[9].mxu1 }
  0xed   :  { %v173_v31 = vpop.f32.mrb[10].mxu1 }
  0xee   :  { %v304_v32 = vpack.c.bf16 %v173_v31, %v169_v29  ;;  %v2194_v33 = vpop.f32.mrb[11].mxu1 }
  0xef   :  { %v366_v34 = vpack.c.bf16 %v2194_v33, %v2192_v30 }
  0xf0   :  { %195 = vrot.lane.b32.xlu1 %v179_v19, %s2106_s30  ;;  %227 = vrot.lane.b32.xlu0 %v179_v19, %s2107_s7  ;;  %306 = vst.msk [vmem:[#allocation2 + $0x108] sm:$0xff] %vm180_vm2, %v304_v32 }
  0xf1   :  { %368 = vst.msk [vmem:[#allocation2 + $0x188] sm:$0xff] %vm180_vm2, %v366_v34 }
  0xf4   :  { %201 = vrot.lane.b32.xlu1 %v178_v17, %s2108_s8  ;;  %233 = vrot.lane.b32.xlu0 %v178_v17, %s2109_s9 }
  0xf8   :  { %203 = vrot.lane.b32.xlu1 %v179_v19, %s2108_s8  ;;  %235 = vrot.lane.b32.xlu0 %v179_v19, %s2109_s9  ;;  %v2055_v19 = vld [vmem:[%s2662_s3 + $0x14] ss:$28 sps:$4 sm:$0xff]  }
  0xfc   :  { %279 = vrot.lane.b32.xlu0 %v2166_v21, %s2103_s0  ;;  %271 = vrot.lane.b32.xlu1 %v2166_v21, %s2104_s28 }
 0x100   :  { %247 = vrot.lane.b32.xlu0 %v2166_v21, %s2105_s29  ;;  %273 = vrot.lane.b32.xlu1 %v2168_v22, %s2104_s28 }
 0x104   :  { %287 = vrot.lane.b32.xlu0 %v2166_v21, %s2107_s7  ;;  %281 = vrot.lane.b32.xlu1 %v2168_v22, %s2103_s0 }
 0x108   :  { %255 = vrot.lane.b32.xlu0 %v2166_v21, %s2106_s30  ;;  %249 = vrot.lane.b32.xlu1 %v2168_v22, %s2105_s29 }
 0x10c   :  { %385 = vrot.lane.b32.xlu0 %v365_v28, %s2105_s29  ;;  %333 = vrot.lane.b32.xlu1 %v303_v26, %s2104_s28  ;;  %v2047_v28 = vld [vmem:[%s2663_s4 + $0x8] sm:$0xff]  }
 0x110   :  { %335 = vrot.lane.b32.xlu0 %v304_v32, %s2104_s28  ;;  %341 = vrot.lane.b32.xlu1 %v303_v26, %s2103_s0 }
 0x114   :  { %387 = vrot.lane.b32.xlu0 %v366_v34, %s2105_s29  ;;  %309 = vrot.lane.b32.xlu1 %v303_v26, %s2105_s29 }
 0x118   :  { %289 = vrot.lane.b32.xlu0 %v2168_v22, %s2107_s7  ;;  %343 = vrot.lane.b32.xlu1 %v304_v32, %s2103_s0 }
 0x11c   :  { %257 = vrot.lane.b32.xlu0 %v2168_v22, %s2106_s30  ;;  %311 = vrot.lane.b32.xlu1 %v304_v32, %s2105_s29 }
 0x120   :  { %295 = vrot.lane.b32.xlu0 %v2166_v21, %s2109_s9  ;;  %349 = vrot.lane.b32.xlu1 %v303_v26, %s2107_s7 }
 0x124   :  { %263 = vrot.lane.b32.xlu0 %v2166_v21, %s2108_s8  ;;  %317 = vrot.lane.b32.xlu1 %v303_v26, %s2106_s30 }
 0x128   :  { %297 = vrot.lane.b32.xlu0 %v2168_v22, %s2109_s9  ;;  %351 = vrot.lane.b32.xlu1 %v304_v32, %s2107_s7 }
 0x12c   :  { %265 = vrot.lane.b32.xlu0 %v2168_v22, %s2108_s8  ;;  %319 = vrot.lane.b32.xlu1 %v304_v32, %s2106_s30 }
 0x130   :  { %357 = vrot.lane.b32.xlu0 %v303_v26, %s2109_s9  ;;  %325 = vrot.lane.b32.xlu1 %v303_v26, %s2108_s8  ;;  %v579_v26 = vld [vmem:[#allocation2 + $0x100] sm:$0xff] }
 0x134   :  { %359 = vrot.lane.b32.xlu0 %v304_v32, %s2109_s9  ;;  %327 = vrot.lane.b32.xlu1 %v304_v32, %s2108_s8 }
 0x138   :  { %667 = vrot.lane.b32.xlu0 %v2180_v24, %s2106_s30  ;;  %669 = vrot.lane.b32.xlu1 %v2182_v27, %s2106_s30 }
 0x13c   :  { %671 = vrot.lane.b32.xlu0 %v2192_v30, %s2106_s30  ;;  %673 = vrot.lane.b32.xlu1 %v2194_v33, %s2106_s30 }
 0x152   :  { %v218_v37 = vpop.permute.xlu1 %217  ;;  %v210_v38 = vpop.permute.xlu0 %209 }
 0x153   :  { %223 = vst.msk [vmem:[#allocation2 + $0x50] sm:$0xff] %vm180_vm2, %v218_v37  ;;  %215 = vst.msk [vmem:[#allocation2 + $0x40] sm:$0xff] %vm180_vm2, %v210_v38  ;;  %v580_v37 = vld [vmem:[#allocation2 + $0x108] sm:$0xff] }
 0x156   :  { %v186_v39 = vpop.permute.xlu1 %185  ;;  %v212_v40 = vpop.permute.xlu0 %211 }
 0x157   :  { %191 = vst.msk [vmem:[#allocation2 + $0x10] sm:$0xff] %vm180_vm2, %v186_v39  ;;  %216 = vst.msk [vmem:[#allocation2 + $0x48] sm:$0xff] %vm180_vm2, %v212_v40 }
 0x15a   :  { %v188_v41 = vpop.permute.xlu1 %187  ;;  %v220_v42 = vpop.permute.xlu0 %219  ;;  %v555_v43 = vld [vmem:[#allocation2 + $0x40] sm:$0xff]  ;;  %v557_v49 = vld [vmem:[#allocation2 + $0x50] sm:$0xff] }
 0x15b   :  { %192 = vst.msk [vmem:[#allocation2 + $0x18] sm:$0xff] %vm180_vm2, %v188_v41  ;;  %224 = vst.msk [vmem:[#allocation2 + $0x58] sm:$0xff] %vm180_vm2, %v220_v42  ;;  %1825 = vmatprep.subr.bf16.mxu1 %v555_v43  ;;  %v564_v43 = vld [vmem:[#allocation2 + $0x88] sm:$0xff] }
 0x15c   :  { %1826 = vmatpush3.bf16.msra.mxu1 %v547_v44 }
 0x15e   :  { %v194_v45 = vpop.permute.xlu1 %193  ;;  %v226_v46 = vpop.permute.xlu0 %225  ;;  %v556_v47 = vld [vmem:[#allocation2 + $0x48] sm:$0xff]  ;;  %v549_v52 = vld [vmem:[#allocation2 + $0x10] sm:$0xff] }
 0x15f   :  { %199 = vst.msk [vmem:[#allocation2 + $0x20] sm:$0xff] %vm180_vm2, %v194_v45  ;;  %231 = vst.msk [vmem:[#allocation2 + $0x60] sm:$0xff] %vm180_vm2, %v226_v46  ;;  %1827 = vmatprep.subr.bf16.mxu1 %v556_v47 }
 0x160   :  { %1828 = vmatpush3.bf16.msra.mxu1 %v548_v48 }
 0x161   :  { %1829 = vmatprep.subr.bf16.mxu1 %v557_v49 }
 0x162   :  { %v196_v50 = vpop.permute.xlu1 %195  ;;  %v228_v51 = vpop.permute.xlu0 %227  ;;  %v558_v53 = vld [vmem:[#allocation2 + $0x58] sm:$0xff] }
 0x163   :  { %200 = vst.msk [vmem:[#allocation2 + $0x28] sm:$0xff] %vm180_vm2, %v196_v50  ;;  %232 = vst.msk [vmem:[#allocation2 + $0x68] sm:$0xff] %vm180_vm2, %v228_v51  ;;  %v550_v56 = vld [vmem:[#allocation2 + $0x18] sm:$0xff] }
 0x164   :  { %1830 = vmatpush3.bf16.msra.mxu1 %v549_v52 }
 0x165   :  { %1831 = vmatprep.subr.bf16.mxu1 %v558_v53 }
 0x166   :  { %v202_v54 = vpop.permute.xlu1 %201  ;;  %v234_v55 = vpop.permute.xlu0 %233  ;;  %v559_v57 = vld [vmem:[#allocation2 + $0x60] sm:$0xff] }
 0x167   :  { %207 = vst.msk [vmem:[#allocation2 + $0x30] sm:$0xff] %vm180_vm2, %v202_v54  ;;  %239 = vst.msk [vmem:[#allocation2 + $0x70] sm:$0xff] %vm180_vm2, %v234_v55  ;;  %v551_v60 = vld [vmem:[#allocation2 + $0x20] sm:$0xff] }
 0x168   :  { %1832 = vmatpush3.bf16.msra.mxu1 %v550_v56 }
 0x169   :  { %1833 = vmatprep.subr.bf16.mxu1 %v559_v57 }
 0x16a   :  { %v204_v58 = vpop.permute.xlu1 %203  ;;  %v236_v59 = vpop.permute.xlu0 %235  ;;  %v560_v61 = vld [vmem:[#allocation2 + $0x68] sm:$0xff] }
 0x16b   :  { %208 = vst.msk [vmem:[#allocation2 + $0x38] sm:$0xff] %vm180_vm2, %v204_v58  ;;  %240 = vst.msk [vmem:[#allocation2 + $0x78] sm:$0xff] %vm180_vm2, %v236_v59  ;;  %v552_v0 = vld [vmem:[#allocation2 + $0x28] sm:$0xff] }
 0x16c   :  { %1834 = vmatpush3.bf16.msra.mxu1 %v551_v60 }
 0x16d   :  { %1835 = vmatprep.subr.bf16.mxu1 %v560_v61 }
 0x16e   :  { %v280_v62 = vpop.permute.xlu0 %279  ;;  %v272_v63 = vpop.permute.xlu1 %271  ;;  %v561_v1 = vld [vmem:[#allocation2 + $0x70] sm:$0xff] }
 0x16f   :  { %285 = vst.msk [vmem:[#allocation2 + $0xd0] sm:$0xff] %vm180_vm2, %v280_v62  ;;  %277 = vst.msk [vmem:[#allocation2 + $0xc0] sm:$0xff] %vm180_vm2, %v272_v63  ;;  %v553_v5 = vld [vmem:[#allocation2 + $0x30] sm:$0xff] }
 0x170   :  { %1836 = vmatpush3.bf16.msra.mxu1 %v552_v0 }
 0x171   :  { %1837 = vmatprep.subr.bf16.mxu1 %v561_v1 }
 0x172   :  { %v248_v3 = vpop.permute.xlu0 %247  ;;  %v274_v4 = vpop.permute.xlu1 %273  ;;  %v562_v6 = vld [vmem:[#allocation2 + $0x78] sm:$0xff] }
 0x173   :  { %253 = vst.msk [vmem:[#allocation2 + $0x90] sm:$0xff] %vm180_vm2, %v248_v3  ;;  %278 = vst.msk [vmem:[#allocation2 + $0xc8] sm:$0xff] %vm180_vm2, %v274_v4  ;;  %v554_v9 = vld [vmem:[#allocation2 + $0x38] sm:$0xff] }
 0x174   :  { %1838 = vmatpush3.bf16.msra.mxu1 %v553_v5 }
 0x175   :  { %1839 = vmatprep.subr.bf16.mxu1 %v562_v6 }
 0x176   :  { %v288_v7 = vpop.permute.xlu0 %287  ;;  %v282_v8 = vpop.permute.xlu1 %281  ;;  %v571_v29 = vld [vmem:[#allocation2 + $0xc0] sm:$0xff]  ;;  %v573_v44 = vld [vmem:[#allocation2 + $0xd0] sm:$0xff] }
 0x177   :  { %293 = vst.msk [vmem:[#allocation2 + $0xe0] sm:$0xff] %vm180_vm2, %v288_v7  ;;  %286 = vst.msk [vmem:[#allocation2 + $0xd8] sm:$0xff] %vm180_vm2, %v282_v8 }
 0x178   :  { %1840 = vmatpush3.bf16.msra.mxu1 %v554_v9 }
 0x17a   :  { %v256_v12 = vpop.permute.xlu0 %255  ;;  %v250_v13 = vpop.permute.xlu1 %249  ;;  %v572_v38 = vld [vmem:[#allocation2 + $0xc8] sm:$0xff]  ;;  %v565_v48 = vld [vmem:[#allocation2 + $0x90] sm:$0xff] }
 0x17b   :  { %261 = vst.msk [vmem:[#allocation2 + $0xa0] sm:$0xff] %vm180_vm2, %v256_v12  ;;  %254 = vst.msk [vmem:[#allocation2 + $0x98] sm:$0xff] %vm180_vm2, %v250_v13  ;;  %718 = vmatmul.mubr.bf16.vlgmr.msra.gmra.mrb[12].mxu1 %v2041_v10  ;;  %v595_v12 = vld [vmem:[#allocation2 + $0x180] sm:$0xff] }
 0x17c   :  { %725 = vmatprep.mubr.bf16.mxu1 %v2044_v11  ;;  %v2335_v11 = vld [vmem:[%s2662_s3 + $0x8] ss:$28 sps:$4 sm:$0xff]  }
 0x17d   :  { %v2340_v13 = vld [vmem:[%s2662_s3 + $0x44] ss:$28 sps:$4 sm:$0xff]  }
 0x17e   :  { %v386_v16 = vpop.permute.xlu0 %385  ;;  %v334_v17 = vpop.permute.xlu1 %333  ;;  %v574_v49 = vld [vmem:[#allocation2 + $0xd8] sm:$0xff]  ;;  %v575_v54 = vld [vmem:[#allocation2 + $0xe0] sm:$0xff] }
 0x17f   :  { %339 = vst.msk [vmem:[#allocation2 + $0x140] sm:$0xff] %vm180_vm2, %v334_v17  ;;  %2001 = vmatprep.subr.bf16.mxu0 %v386_v16 }
 0x180   :  { %2002 = vmatpush3.bf16.msra.mxu0 %v386_v16  ;;  %v596_v16 = vld [vmem:[#allocation2 + $0x188] sm:$0xff] }
 0x182   :  { %v336_v20 = vpop.permute.xlu0 %335  ;;  %v342_v21 = vpop.permute.xlu1 %341  ;;  %v566_v53 = vld [vmem:[#allocation2 + $0x98] sm:$0xff]  ;;  %v567_v58 = vld [vmem:[#allocation2 + $0xa0] sm:$0xff] }
 0x183   :  { %340 = vst.msk [vmem:[#allocation2 + $0x148] sm:$0xff] %vm180_vm2, %v336_v20  ;;  %347 = vst.msk [vmem:[#allocation2 + $0x150] sm:$0xff] %vm180_vm2, %v342_v21  ;;  %726 = vmatmul.mubr.bf16.gmra.mrb[16].mxu1 %v1780_v18  ;;  %v2352_v20 = vld [vmem:[%s2662_s3 + $0x40] ss:$28 sps:$4 sm:$0xff]   ;;  %v2057_v21 = vld [vmem:[%s2662_s3 + $0x4c] ss:$28 sps:$4 sm:$0xff]  }
 0x184   :  { %815 = vmatprep.mubr.bf16.mxu1 %v2055_v19  ;;  %v2347_v19 = vld [vmem:[%s2662_s3 + $0x10] ss:$28 sps:$4 sm:$0xff]  }
 0x186   :  { %v388_v22 = vpop.permute.xlu0 %387  ;;  %v310_v23 = vpop.permute.xlu1 %309  ;;  %v587_v25 = vld [vmem:[#allocation2 + $0x140] sm:$0xff] }
 0x187   :  { %315 = vst.msk [vmem:[#allocation2 + $0x110] sm:$0xff] %vm180_vm2, %v310_v23  ;;  %2003 = vmatprep.subr.bf16.mxu0 %v388_v22  ;;  %1881 = vmatprep.subr.bf16.mxu1 %v587_v25  ;;  %v2060_v23 = vld [vmem:[%s2662_s3 + $0x48] ss:$28 sps:$4 sm:$0xff]   ;;  %v2061_v25 = vld [vmem:[%s2662_s3 + $0x50] ss:$28 sps:$4 sm:$0xff]  }
 0x188   :  { %2004 = vmatpush3.bf16.msra.mxu0 %v388_v22  ;;  %1882 = vmatpush3.bf16.msra.mxu1 %v579_v26  ;;  %v2059_v22 = vld [vmem:[%s2662_s3 + $0x18] ss:$28 sps:$4 sm:$0xff]  }
 0x189   :  { %1853 = vmatprep.subr.bf16.mxu0 %v571_v29 }
 0x18a   :  { %v290_v31 = vpop.permute.xlu0 %289  ;;  %v344_v32 = vpop.permute.xlu1 %343  ;;  %v588_v34 = vld [vmem:[#allocation2 + $0x148] sm:$0xff]  ;;  %v589_v39 = vld [vmem:[#allocation2 + $0x150] sm:$0xff] }
 0x18b   :  { %294 = vst.msk [vmem:[#allocation2 + $0xe8] sm:$0xff] %vm180_vm2, %v290_v31  ;;  %348 = vst.msk [vmem:[#allocation2 + $0x158] sm:$0xff] %vm180_vm2, %v344_v32  ;;  %2006 = vmatmul.mubr.msk.bf16.vlgmr.msra.gmra.mrb[4].mxu0 %vm407_vm3, %v2047_v28  ;;  %1883 = vmatprep.subr.bf16.mxu1 %v588_v34 }
 0x18c   :  { %1854 = vmatpush3.bf16.msra.mxu0 %v563_v36  ;;  %1884 = vmatpush3.bf16.msra.mxu1 %v580_v37 }
 0x18d   :  { %1855 = vmatprep.subr.bf16.mxu0 %v572_v38  ;;  %1885 = vmatprep.subr.bf16.mxu1 %v589_v39 }
 0x18e   :  { %v258_v40 = vpop.permute.xlu0 %257  ;;  %v312_v41 = vpop.permute.xlu1 %311  ;;  %v581_v42 = vld [vmem:[#allocation2 + $0x110] sm:$0xff]  ;;  %766 = vmatprep.mubr.bf16.mxu0 %v2312_v35 }
 0x18f   :  { %262 = vst.msk [vmem:[#allocation2 + $0xa8] sm:$0xff] %vm180_vm2, %v258_v40  ;;  %316 = vst.msk [vmem:[#allocation2 + $0x118] sm:$0xff] %vm180_vm2, %v312_v41  ;;  %v2064_v41 = vld [vmem:[%s2664_s2 + $0x4] ss:$16 sps:$4 sm:$0xff]  }
 0x190   :  { %1856 = vmatpush3.bf16.msra.mxu0 %v564_v43  ;;  %1886 = vmatpush3.bf16.msra.mxu1 %v581_v42  ;;  %v2062_v43 = vld [vmem:[%s2664_s2] ss:$16 sps:$4 sm:$0xff]  }
 0x191   :  { %1857 = vmatprep.subr.bf16.mxu0 %v573_v44  ;;  %v2065_v44 = vld [vmem:[%s2664_s2 + $0x8] ss:$16 sps:$4 sm:$0xff]  }
 0x192   :  { %v296_v45 = vpop.permute.xlu0 %295  ;;  %v350_v46 = vpop.permute.xlu1 %349  ;;  %v590_v47 = vld [vmem:[#allocation2 + $0x158] sm:$0xff]  ;;  %v576_v59 = vld [vmem:[#allocation2 + $0xe8] sm:$0xff] }
 0x193   :  { %301 = vst.msk [vmem:[#allocation2 + $0xf0] sm:$0xff] %vm180_vm2, %v296_v45  ;;  %355 = vst.msk [vmem:[#allocation2 + $0x160] sm:$0xff] %vm180_vm2, %v350_v46  ;;  %1887 = vmatprep.subr.bf16.mxu1 %v590_v47  ;;  %v2067_v45 = vld [vmem:[%s2664_s2 + $0xc] ss:$16 sps:$4 sm:$0xff]  }
 0x194   :  { %1858 = vmatpush3.bf16.msra.mxu0 %v565_v48 }
 0x195   :  { %1859 = vmatprep.subr.bf16.mxu0 %v574_v49 }
 0x196   :  { %v264_v50 = vpop.permute.xlu0 %263  ;;  %v318_v51 = vpop.permute.xlu1 %317  ;;  %v582_v52 = vld [vmem:[#allocation2 + $0x118] sm:$0xff]  ;;  %v568_v63 = vld [vmem:[#allocation2 + $0xa8] sm:$0xff] }
 0x197   :  { %269 = vst.msk [vmem:[#allocation2 + $0xb0] sm:$0xff] %vm180_vm2, %v264_v50  ;;  %323 = vst.msk [vmem:[#allocation2 + $0x120] sm:$0xff] %vm180_vm2, %v318_v51  ;;  %1888 = vmatpush3.bf16.msra.mxu1 %v582_v52 }
 0x198   :  { %1860 = vmatpush3.bf16.msra.mxu0 %v566_v53 }
 0x199   :  { %1861 = vmatprep.subr.bf16.mxu0 %v575_v54 }
 0x19a   :  { %v298_v55 = vpop.permute.xlu0 %297  ;;  %v352_v56 = vpop.permute.xlu1 %351  ;;  %v591_v57 = vld [vmem:[#allocation2 + $0x160] sm:$0xff]  ;;  %v577_v0 = vld [vmem:[#allocation2 + $0xf0] sm:$0xff] }
 0x19b   :  { %302 = vst.msk [vmem:[#allocation2 + $0xf8] sm:$0xff] %vm180_vm2, %v298_v55  ;;  %356 = vst.msk [vmem:[#allocation2 + $0x168] sm:$0xff] %vm180_vm2, %v352_v56  ;;  %1889 = vmatprep.subr.bf16.mxu1 %v591_v57 }
 0x19c   :  { %1862 = vmatpush3.bf16.msra.mxu0 %v567_v58  ;;  %v463_v58 = vlaneseq }
 0x19d   :  { %1863 = vmatprep.subr.bf16.mxu0 %v576_v59 }
 0x19e   :  { %v266_v60 = vpop.permute.xlu0 %265  ;;  %v320_v61 = vpop.permute.xlu1 %319  ;;  %v583_v62 = vld [vmem:[#allocation2 + $0x120] sm:$0xff]  ;;  %v569_v5 = vld [vmem:[#allocation2 + $0xb0] sm:$0xff] }
 0x19f   :  { %270 = vst.msk [vmem:[#allocation2 + $0xb8] sm:$0xff] %vm180_vm2, %v266_v60  ;;  %324 = vst.msk [vmem:[#allocation2 + $0x128] sm:$0xff] %vm180_vm2, %v320_v61  ;;  %1890 = vmatpush3.bf16.msra.mxu1 %v583_v62 }
 0x1a0   :  { %1864 = vmatpush3.bf16.msra.mxu0 %v568_v63 }
 0x1a1   :  { %1865 = vmatprep.subr.bf16.mxu0 %v577_v0 }
 0x1a2   :  { %v358_v1 = vpop.permute.xlu0 %357  ;;  %v326_v3 = vpop.permute.xlu1 %325  ;;  %v592_v4 = vld [vmem:[#allocation2 + $0x168] sm:$0xff]  ;;  %v578_v6 = vld [vmem:[#allocation2 + $0xf8] sm:$0xff] }
 0x1a3   :  { %363 = vst.msk [vmem:[#allocation2 + $0x170] sm:$0xff] %vm180_vm2, %v358_v1  ;;  %331 = vst.msk [vmem:[#allocation2 + $0x130] sm:$0xff] %vm180_vm2, %v326_v3  ;;  %1891 = vmatprep.subr.bf16.mxu1 %v592_v4  ;;  %v2392_v1 = vshrl.u32 %v463_v58, 7 }
 0x1a4   :  { %1866 = vmatpush3.bf16.msra.mxu0 %v569_v5 }
 0x1a5   :  { %1867 = vmatprep.subr.bf16.mxu0 %v578_v6 }
 0x1a6   :  { %v360_v7 = vpop.permute.xlu0 %359  ;;  %v328_v8 = vpop.permute.xlu1 %327  ;;  %v584_v9 = vld [vmem:[#allocation2 + $0x128] sm:$0xff]  ;;  %v570_v10 = vld [vmem:[#allocation2 + $0xb8] sm:$0xff] }
 0x1a7   :  { %364 = vst.msk [vmem:[#allocation2 + $0x178] sm:$0xff] %vm180_vm2, %v360_v7  ;;  %332 = vst.msk [vmem:[#allocation2 + $0x138] sm:$0xff] %vm180_vm2, %v328_v8  ;;  %1892 = vmatpush3.bf16.msra.mxu1 %v584_v9 }
 0x1a8   :  { %1868 = vmatpush3.bf16.msra.mxu0 %v570_v10 }
 0x1a9   :  { %2009 = vmatprep.subr.bf16.mxu0 %v595_v12 }
 0x1aa   :  { %v593_v14 = vld [vmem:[#allocation2 + $0x170] sm:$0xff]  ;;  %v668_v50 = vpop.permute.xlu0 %667  ;;  %v670_v52 = vpop.permute.xlu1 %669 }
 0x1ab   :  { %v585_v15 = vld [vmem:[#allocation2 + $0x130] sm:$0xff]  ;;  %767 = vmatmul.mubr.bf16.vlgmr.msra.gmra.mrb[8].mxu0 %v2335_v11  ;;  %1893 = vmatprep.subr.bf16.mxu1 %v593_v14 }
 0x1ac   :  { %1894 = vmatpush3.bf16.msra.mxu1 %v585_v15  ;;  %2010 = vmatpush3.bf16.msra.mxu0 %v595_v12 }
 0x1ad   :  { %2011 = vmatprep.subr.bf16.mxu0 %v596_v16  ;;  %774 = vmatprep.mubr.bf16.mxu0 %v2340_v13 }
 0x1ae   :  { %v594_v17 = vld [vmem:[#allocation2 + $0x178] sm:$0xff]  ;;  %v672_v63 = vpop.permute.xlu0 %671  ;;  %v674_v0 = vpop.permute.xlu1 %673 }
 0x1af   :  { %v586_v18 = vld [vmem:[#allocation2 + $0x138] sm:$0xff]  ;;  %1895 = vmatprep.subr.bf16.mxu1 %v594_v17  ;;  %v525_v17 = vsub.s32 0, %v2392_v1 }
 0x1b0   :  { %1896 = vmatpush3.bf16.msra.mxu1 %v586_v18  ;;  %2012 = vmatpush3.bf16.msra.mxu0 %v596_v16 }
 0x1b1   :  { %1004 = vmatprep.subr.bf16.mxu0 %v2064_v41  ;;  %1057 = vmatprep.subr.bf16.mxu1 %v2067_v45 }
 0x1b3   :  { %775 = vmatmul.mubr.bf16.gmra.mrb[12].mxu0 %v2352_v20  ;;  %816 = vmatmul.mubr.bf16.vlgmr.msra.gmra.mrb[20].mxu1 %v2347_v19 }
 0x1b4   :  { %823 = vmatprep.mubr.bf16.mxu1 %v2057_v21  ;;  %2013 = vmatprep.mubr.msk.bf16.mxu0 %vm407_vm3, %v2059_v22 }
 0x1b5   :  { %1058 = vmatpush1.bf16.msra.mxu1 %v2065_v44 }
 0x1bb   :  { %824 = vmatmul.mubr.bf16.gmra.mrb[24].mxu1 %v2060_v23  ;;  %2014 = vmatmul.mubr.msk.bf16.vlgmr.msra.gmra.mrb[16].mxu0 %vm407_vm3, %v2061_v25  ;;  %v2398_v25 = vld [vmem:[%s2665_s5] sm:$0xff] }
 0x1bc   :  { %1036 = vmatprep.mubr.bf16.mxu0 %v2102_v2  ;;  %1089 = vmatprep.mubr.bf16.mxu1 %v2102_v2 }
 0x1bd   :  { %1005 = vmatpush1.bf16.msra.mxu0 %v2062_v43 }
 0x24e   :  { %v1841_v26 = vpop.f32.mrb[12].mxu1 }
 0x24f   :  { %v1842_v28 = vpop.f32.mrb[13].mxu1 }
 0x250   :  { %v1843_v29 = vadd.f32 %v1842_v28, %v1841_v26  ;;  %v1844_v31 = vpop.f32.mrb[14].mxu1 }
 0x251   :  { %v1845_v32 = vpop.f32.mrb[15].mxu1 }
 0x252   :  { %v1846_v34 = vadd.f32 %v1845_v32, %v1844_v31  ;;  %v720_v54 = vadd.f32 %v1843_v29, %v668_v50  ;;  %v884_v32 = vrot.slane %v2398_v25, %v525_v17 }
 0x254   :  { %v723_v59 = vadd.f32 %v1846_v34, %v670_v52 }
 0x256   :  { %v1847_v36 = vpop.f32.mrb[16].mxu1 }
 0x257   :  { %v1848_v37 = vpop.f32.mrb[17].mxu1 }
 0x258   :  { %v1849_v38 = vadd.f32 %v1848_v37, %v1847_v36  ;;  %v1850_v39 = vpop.f32.mrb[18].mxu1 }
 0x259   :  { %v1851_v40 = vpop.f32.mrb[19].mxu1 }
 0x25a   :  { %v1852_v42 = vadd.f32 %v1851_v40, %v1850_v39  ;;  %v728_v7 = vadd.f32 %v1849_v38, %v672_v63 }
 0x25c   :  { %v731_v14 = vadd.f32 %v1852_v42, %v674_v0 }
 0x25e   :  { %v2384_v46 = vpop.f32.mrb[4].mxu0 }
 0x25f   :  { %v2386_v47 = vpop.f32.mrb[5].mxu0 }
 0x260   :  { %v2388_v48 = vpop.f32.mrb[6].mxu0 }
 0x261   :  { %v2390_v49 = vpop.f32.mrb[7].mxu0 }
 0x27e   :  { %v1869_v51 = vpop.f32.mrb[8].mxu0 }
 0x27f   :  { %v1870_v53 = vpop.f32.mrb[9].mxu0 }
 0x280   :  { %v1871_v55 = vadd.f32 %v1870_v53, %v1869_v51  ;;  %v1872_v56 = vpop.f32.mrb[10].mxu0 }
 0x281   :  { %v1873_v57 = vpop.f32.mrb[11].mxu0 }
 0x282   :  { %v769_v60 = vadd.f32 %v1871_v55, %v720_v54  ;;  %v1874_v61 = vadd.f32 %v1873_v57, %v1872_v56 }
 0x284   :  { %v772_v62 = vadd.f32 %v1874_v61, %v723_v59 }
 0x286   :  { %v1875_v3 = vpop.f32.mrb[12].mxu0  ;;  %v1897_v4 = vpop.f32.mrb[20].mxu1 }
 0x287   :  { %v1876_v5 = vpop.f32.mrb[13].mxu0  ;;  %v1898_v6 = vpop.f32.mrb[21].mxu1 }
 0x288   :  { %v1877_v8 = vadd.f32 %v1876_v5, %v1875_v3  ;;  %v1899_v9 = vadd.f32 %v1898_v6, %v1897_v4  ;;  %v1878_v10 = vpop.f32.mrb[14].mxu0  ;;  %v1900_v12 = vpop.f32.mrb[22].mxu1 }
 0x289   :  { %v1879_v15 = vpop.f32.mrb[15].mxu0  ;;  %v1901_v16 = vpop.f32.mrb[23].mxu1 }
 0x28a   :  { %v777_v18 = vadd.f32 %v1877_v8, %v728_v7  ;;  %v1880_v21 = vadd.f32 %v1879_v15, %v1878_v10  ;;  %v1902_v22 = vadd.f32 %v1901_v16, %v1900_v12  ;;  %v818_v23 = vadd.f32 %v1899_v9, %v769_v60 }
 0x28c   :  { %v780_v26 = vadd.f32 %v1880_v21, %v731_v14  ;;  %v821_v28 = vadd.f32 %v1902_v22, %v772_v62 }
 0x28e   :  { %v1903_v29 = vpop.f32.mrb[24].mxu1  ;;  %v2015_v31 = vpop.f32.mrb[16].mxu0 }
 0x28f   :  { %v1904_v34 = vpop.f32.mrb[25].mxu1  ;;  %v866_v36 = vpop.f32.mrb[17].mxu0 }
 0x290   :  { %v1905_v37 = vadd.f32 %v1904_v34, %v1903_v29  ;;  %v867_v38 = vadd.f32 %v866_v36, %v818_v23  ;;  %v1906_v39 = vpop.f32.mrb[26].mxu1  ;;  %v2016_v40 = vpop.f32.mrb[18].mxu0 }
 0x291   :  { %v1907_v41 = vpop.f32.mrb[27].mxu1  ;;  %v869_v42 = vpop.f32.mrb[19].mxu0 }
 0x292   :  { %v826_v43 = vadd.f32 %v1905_v37, %v777_v18  ;;  %v885_v44 = vadd.f32 %v884_v32, %v867_v38  ;;  %v1908_v45 = vadd.f32 %v1907_v41, %v1906_v39  ;;  %v870_v50 = vadd.f32 %v869_v42, %v821_v28 }
 0x293   :  { %v929_v42 = vsub.s32 1, %v2392_v1 }
 0x294   :  { %v875_v51 = vadd.f32 %v2015_v31, %v826_v43  ;;  %v829_v52 = vadd.f32 %v1908_v45, %v780_v26  ;;  %v903_v53 = vmul.f32 %v885_v44, %v885_v44  ;;  %v886_v54 = vadd.f32 %v884_v32, %v870_v50 }
 0x295   :  { %v889_v57 = vsel %vm180_vm2, %v885_v44, 0.0 }
 0x296   :  { %v887_v55 = vadd.f32 %v884_v32, %v875_v51  ;;  %v878_v56 = vadd.f32 %v2016_v40, %v829_v52  ;;  %v890_v58 = vsel %vm180_vm2, %v886_v54, 0.0  ;;  %v904_v59 = vmul.f32 %v886_v54, %v886_v54 }
 0x297   :  { %v891_v62 = vadd.f32 %v890_v58, %v889_v57  ;;  %v907_v0 = vsel %vm180_vm2, %v903_v53, 0.0  ;;  %v942_v52 = vsub.s32 2, %v2392_v1 }
 0x298   :  { %v905_v60 = vmul.f32 %v887_v55, %v887_v55  ;;  %v888_v61 = vadd.f32 %v884_v32, %v878_v56  ;;  %v892_v63 = vsel %vm180_vm2, %v887_v55, 0.0  ;;  %v908_v3 = vsel %vm180_vm2, %v904_v59, 0.0 }
 0x299   :  { %v893_v6 = vadd.f32 %v892_v63, %v891_v62  ;;  %v909_v7 = vadd.f32 %v908_v3, %v907_v0 }
 0x29a   :  { %v894_v4 = vsel %vm180_vm2, %v888_v61, 0.0  ;;  %v906_v5 = vmul.f32 %v888_v61, %v888_v61  ;;  %v910_v8 = vsel %vm180_vm2, %v905_v60, 0.0 }
 0x29b   :  { %v895_v10 = vadd.f32 %v894_v4, %v893_v6  ;;  %v911_v12 = vadd.f32 %v910_v8, %v909_v7 }
 0x29c   :  { %v912_v9 = vsel %vm180_vm2, %v906_v5, 0.0 }
 0x29d   :  { %v896_v14 = vrot.slane %v895_v10, 4  ;;  %v913_v15 = vadd.f32 %v912_v9, %v911_v12 }
 0x29f   :  { %v897_v16 = vadd.f32 %v896_v14, %v895_v10  ;;  %v914_v18 = vrot.slane %v913_v15, 4 }
 0x2a1   :  { %v898_v21 = vrot.slane %v897_v16, 2  ;;  %v915_v22 = vadd.f32 %v914_v18, %v913_v15 }
 0x2a3   :  { %v899_v23 = vadd.f32 %v898_v21, %v897_v16  ;;  %v916_v26 = vrot.slane %v915_v22, 2 }
 0x2a5   :  { %v900_v28 = vrot.slane %v899_v23, 1  ;;  %v917_v29 = vadd.f32 %v916_v26, %v915_v22 }
 0x2a7   :  { %v901_v31 = vadd.f32 %v900_v28, %v899_v23  ;;  %v918_v32 = vrot.slane %v917_v29, 1 }
 0x2a9   :  { %v902_v34 = vmul.f32 0.03125, %v901_v31  ;;  %v919_v36 = vadd.f32 %v918_v32, %v917_v29 }
 0x2ab   :  { %v920_v37 = vmul.f32 0.03125, %v919_v36  ;;  %v921_v38 = vmul.f32 %v902_v34, %v902_v34 }
 0x2ad   :  { %v922_v39 = vsub.f32 %v920_v37, %v921_v38 }
 0x2af   :  { %v923_v40 = vmax.f32 %v922_v39, 0.0 }
 0x2b1   :  { %v924_v41 = vadd.f32 1e-05, %v923_v40 }
 0x2b3   :  { %2078 = vrsqrt.f32 %v924_v41 }
 0x2bd   :  { %v2079_v43 = vpop.eup %2078 }
 0x2be   :  { %v926_v45 = vmul.f32 %v2079_v43, %v2398_v25 }
 0x2c0   :  { %v930_v50 = vrot.slane %v926_v45, %v929_v42  ;;  %v935_v51 = vmul.f32 %v926_v45, %v902_v34 }
 0x2c2   :  { %v932_v53 = vmul.f32 %v930_v50, %v886_v54  ;;  %v937_v56 = vrot.slane %v935_v51, 7  ;;  %v931_v57 = vmul.f32 %v930_v50, %v885_v44  ;;  %v933_v58 = vmul.f32 %v930_v50, %v887_v55 }
 0x2c3   :  { %v934_v59 = vmul.f32 %v930_v50, %v888_v61 }
 0x2c4   :  { %v939_v60 = vsub.f32 %v2398_v25, %v937_v56 }
 0x2c6   :  { %v943_v62 = vrot.slane %v939_v60, %v942_v52 }
 0x2c8   :  { %v945_v63 = vadd.f32 %v943_v62, %v932_v53  ;;  %v944_v0 = vadd.f32 %v943_v62, %v931_v57  ;;  %v946_v3 = vadd.f32 %v943_v62, %v933_v58  ;;  %v947_v4 = vadd.f32 %v943_v62, %v934_v59 }
 0x2ca   :  { %v953_v5 = vmin.f32 %v945_v63, 0.0  ;;  %v952_v6 = vmin.f32 %v944_v0, 0.0  ;;  %v954_v7 = vmin.f32 %v946_v3, 0.0  ;;  %v955_v8 = vmin.f32 %v947_v4, 0.0 }
 0x2cb   :  { %vm949_vm4 = vcmp.gt.f32.partialorder %v945_v63, 0.0  ;;  %vm948_vm5 = vcmp.gt.f32.partialorder %v944_v0, 0.0  ;;  %vm950_vm6 = vcmp.gt.f32.partialorder %v946_v3, 0.0  ;;  %vm951_vm7 = vcmp.gt.f32.partialorder %v947_v4, 0.0 }
 0x2cc   :  { %v958_v9 = vmul.f32 1.442695, %v953_v5  ;;  %v956_v10 = vmul.f32 1.442695, %v952_v6  ;;  %v960_v12 = vmul.f32 1.442695, %v954_v7 }
 0x2cd   :  { %v962_v14 = vmul.f32 1.442695, %v955_v8 }
 0x2ce   :  { %2080 = vpow2.f32 %v958_v9 }
 0x2cf   :  { %2082 = vpow2.f32 %v956_v10 }
 0x2d0   :  { %2084 = vpow2.f32 %v960_v12 }
 0x2d1   :  { %2086 = vpow2.f32 %v962_v14 }
 0x2d8   :  { %v2081_v44 = vpop.eup %2080 }
 0x2d9   :  { %v2083_v54 = vpop.eup %2082  ;;  %v1790_v55 = vadd.f32 -1.0, %v2081_v44 }
 0x2da   :  { %v2085_v61 = vpop.eup %2084  ;;  %v1789_v15 = vadd.f32 -1.0, %v2083_v54 }
 0x2db   :  { %v2087_v16 = vpop.eup %2086  ;;  %v969_v18 = vsel %vm949_vm4, %v945_v63, %v1790_v55  ;;  %v1791_v21 = vadd.f32 -1.0, %v2085_v61 }
 0x2dc   :  { %v968_v22 = vsel %vm948_vm5, %v944_v0, %v1789_v15  ;;  %v1792_v23 = vadd.f32 -1.0, %v2087_v16  ;;  %v2070_v0 = vld [vmem:[%s2662_s3 + $0x4] ss:$28 sps:$4 sm:$0xff]  }
 0x2dd   :  { %v972_v26 = vpack.c.bf16 %v969_v18, %v968_v22  ;;  %v970_v28 = vsel %vm950_vm6, %v946_v3, %v1791_v21 }
 0x2de   :  { %v971_v29 = vsel %vm951_vm7, %v947_v4, %v1792_v23 }
 0x2df   :  { %1797 = vmatmul.mubr.msk.bf16.vlgmr.msra.gmra.mrb[20].mxu0 %vm180_vm2, %v972_v26  ;;  %1799 = vmatmul.mubr.msk.bf16.vlgmr.msra.gmra.mrb[28].mxu1 %vm180_vm2, %v972_v26  ;;  %v973_v31 = vpack.c.bf16 %v971_v29, %v970_v28 }
 0x2e0   :  { %1046 = vmatprep.mubr.bf16.mxu0 %v2102_v2  ;;  %1099 = vmatprep.mubr.bf16.mxu1 %v2102_v2 }
 0x2e7   :  { %1798 = vmatmul.mubr.msk.bf16.gmra.mrb[24].mxu0 %vm180_vm2, %v973_v31  ;;  %1800 = vmatmul.mubr.msk.bf16.gmra.mrb[32].mxu1 %vm180_vm2, %v973_v31 }
 0x2e8   :  { %1539 = vmatprep.mubr.bf16.mxu1 %v2312_v35  ;;  %1490 = vmatprep.mubr.bf16.mxu0 %v2070_v0 }
 0x3b2   :  { %v1038_v32 = vpop.f32.mrb[20].mxu0  ;;  %v1091_v34 = vpop.f32.mrb[28].mxu1 }
 0x3b3   :  { %v1040_v36 = vpop.f32.mrb[21].mxu0  ;;  %v2422_v37 = vpop.f32.mrb[29].mxu1 }
 0x3b4   :  { %v1042_v38 = vpop.f32.mrb[22].mxu0  ;;  %v1095_v39 = vpop.f32.mrb[30].mxu1 }
 0x3b5   :  { %v1110_v40 = vpack.c.bf16 %v1042_v38, %v1038_v32  ;;  %v2424_v41 = vpack.c.bf16 %v1095_v39, %v1091_v34  ;;  %v1044_v42 = vpop.f32.mrb[23].mxu0  ;;  %v2426_v43 = vpop.f32.mrb[31].mxu1 }
 0x3b6   :  { %v1172_v2 = vpack.c.bf16 %v1044_v42, %v1040_v36  ;;  %v1296_v45 = vpack.c.bf16 %v2426_v43, %v2422_v37 }
 0x3b7   :  { %1112 = vst.msk [vmem:[#allocation2] sm:$0xff] %vm180_vm2, %v1110_v40  ;;  %1236 = vst.msk [vmem:[#allocation2 + $0x100] sm:$0xff] %vm180_vm2, %v2424_v41  ;;  %1116 = vrot.lane.b32.xlu1 %v1110_v40, %s2105_s29  ;;  %1140 = vrot.lane.b32.xlu0 %v1110_v40, %s2104_s28 }
 0x3b8   :  { %1174 = vst.msk [vmem:[#allocation2 + $0x80] sm:$0xff] %vm180_vm2, %v1172_v2  ;;  %1298 = vst.msk [vmem:[#allocation2 + $0x180] sm:$0xff] %vm180_vm2, %v1296_v45 }
 0x3ba   :  { %v1048_v35 = vpop.f32.mrb[24].mxu0  ;;  %v1101_v50 = vpop.f32.mrb[32].mxu1 }
 0x3bb   :  { %v1103_v51 = vpop.f32.mrb[33].mxu1  ;;  %1124 = vrot.lane.b32.xlu1 %v1110_v40, %s2106_s30  ;;  %1148 = vrot.lane.b32.xlu0 %v1110_v40, %s2103_s0  ;;  %v1050_v52 = vpop.f32.mrb[25].mxu0 }
 0x3bc   :  { %v1052_v53 = vpop.f32.mrb[26].mxu0  ;;  %v1105_v56 = vpop.f32.mrb[34].mxu1 }
 0x3bd   :  { %v1111_v57 = vpack.c.bf16 %v1052_v53, %v1048_v35  ;;  %v1235_v58 = vpack.c.bf16 %v1105_v56, %v1101_v50  ;;  %v1054_v59 = vpop.f32.mrb[27].mxu0  ;;  %v1107_v60 = vpop.f32.mrb[35].mxu1 }
 0x3be   :  { %v1173_v62 = vpack.c.bf16 %v1054_v59, %v1050_v52  ;;  %v1297_v63 = vpack.c.bf16 %v1107_v60, %v1103_v51 }
 0x3bf   :  { %1113 = vst.msk [vmem:[#allocation2 + $0x8] sm:$0xff] %vm180_vm2, %v1111_v57  ;;  %1237 = vst.msk [vmem:[#allocation2 + $0x108] sm:$0xff] %vm180_vm2, %v1235_v58  ;;  %1264 = vrot.lane.b32.xlu1 %v2424_v41, %s2104_s28  ;;  %1156 = vrot.lane.b32.xlu0 %v1110_v40, %s2107_s7  ;;  %v1332_v61 = vld [vmem:[#allocation2 + $0x80] sm:$0xff] }
 0x3c0   :  { %1175 = vst.msk [vmem:[#allocation2 + $0x88] sm:$0xff] %vm180_vm2, %v1173_v62  ;;  %1299 = vst.msk [vmem:[#allocation2 + $0x188] sm:$0xff] %vm180_vm2, %v1297_v63 }
 0x3c3   :  { %1272 = vrot.lane.b32.xlu1 %v2424_v41, %s2103_s0  ;;  %1164 = vrot.lane.b32.xlu0 %v1110_v40, %s2109_s9 }
 0x3c6   :  { %v1317_v21 = vld [vmem:[#allocation2 + $0x8] sm:$0xff] }
 0x3c7   :  { %1132 = vrot.lane.b32.xlu0 %v1110_v40, %s2108_s8  ;;  %1202 = vrot.lane.b32.xlu1 %v1172_v2, %s2104_s28 }
 0x3cb   :  { %1210 = vrot.lane.b32.xlu0 %v1172_v2, %s2103_s0  ;;  %1142 = vrot.lane.b32.xlu1 %v1111_v57, %s2104_s28 }
 0x3cf   :  { %1178 = vrot.lane.b32.xlu0 %v1172_v2, %s2105_s29  ;;  %1240 = vrot.lane.b32.xlu1 %v2424_v41, %s2105_s29 }
 0x3d3   :  { %1218 = vrot.lane.b32.xlu0 %v1172_v2, %s2107_s7  ;;  %1118 = vrot.lane.b32.xlu1 %v1111_v57, %s2105_s29 }
 0x3d7   :  { %1150 = vrot.lane.b32.xlu0 %v1111_v57, %s2103_s0  ;;  %1126 = vrot.lane.b32.xlu1 %v1111_v57, %s2106_s30 }
 0x3db   :  { %1186 = vrot.lane.b32.xlu0 %v1172_v2, %s2106_s30  ;;  %1166 = vrot.lane.b32.xlu1 %v1111_v57, %s2109_s9 }
 0x3df   :  { %1158 = vrot.lane.b32.xlu0 %v1111_v57, %s2107_s7  ;;  %1134 = vrot.lane.b32.xlu1 %v1111_v57, %s2108_s8 }
 0x3e3   :  { %1266 = vrot.lane.b32.xlu0 %v1235_v58, %s2104_s28  ;;  %1274 = vrot.lane.b32.xlu1 %v1235_v58, %s2103_s0 }
 0x3e7   :  { %1242 = vrot.lane.b32.xlu1 %v1235_v58, %s2105_s29  ;;  %1204 = vrot.lane.b32.xlu0 %v1173_v62, %s2104_s28 }
 0x3eb   :  { %1212 = vrot.lane.b32.xlu1 %v1173_v62, %s2103_s0  ;;  %1226 = vrot.lane.b32.xlu0 %v1172_v2, %s2109_s9 }
 0x3ef   :  { %1180 = vrot.lane.b32.xlu1 %v1173_v62, %s2105_s29  ;;  %1194 = vrot.lane.b32.xlu0 %v1172_v2, %s2108_s8 }
 0x3f3   :  { %1280 = vrot.lane.b32.xlu1 %v2424_v41, %s2107_s7  ;;  %1220 = vrot.lane.b32.xlu0 %v1173_v62, %s2107_s7 }
 0x3f7   :  { %1248 = vrot.lane.b32.xlu1 %v2424_v41, %s2106_s30  ;;  %1188 = vrot.lane.b32.xlu0 %v1173_v62, %s2106_s30 }
 0x3fb   :  { %1282 = vrot.lane.b32.xlu1 %v1235_v58, %s2107_s7  ;;  %1228 = vrot.lane.b32.xlu0 %v1173_v62, %s2109_s9 }
 0x3ff   :  { %1250 = vrot.lane.b32.xlu1 %v1235_v58, %s2106_s30  ;;  %1196 = vrot.lane.b32.xlu0 %v1173_v62, %s2108_s8  ;;  %v2068_v62 = vld [vmem:[%s2662_s3] ss:$28 sps:$4 sm:$0xff]  }
 0x403   :  { %1256 = vrot.lane.b32.xlu1 %v2424_v41, %s2108_s8  ;;  %1288 = vrot.lane.b32.xlu0 %v2424_v41, %s2109_s9 }
 0x407   :  { %1258 = vrot.lane.b32.xlu1 %v1235_v58, %s2108_s8  ;;  %1290 = vrot.lane.b32.xlu0 %v1235_v58, %s2109_s9 }
 0x40b   :  { %1442 = vrot.lane.b32.xlu1 %v2426_v43, %s2105_s29  ;;  %1440 = vrot.lane.b32.xlu0 %v2422_v37, %s2105_s29 }
 0x40f   :  { %1446 = vrot.lane.b32.xlu1 %v1107_v60, %s2105_s29  ;;  %1444 = vrot.lane.b32.xlu0 %v1103_v51, %s2105_s29  ;;  %v1333_v60 = vld [vmem:[#allocation2 + $0x88] sm:$0xff] }
 0x413   :  { %397 = vrot.lane.b32.xlu1 %v2182_v27, %s2108_s8  ;;  %395 = vrot.lane.b32.xlu0 %v2180_v24, %s2108_s8 }
 0x417   :  { %401 = vrot.lane.b32.xlu1 %v2194_v33, %s2108_s8  ;;  %399 = vrot.lane.b32.xlu0 %v2192_v30, %s2108_s8  ;;  %v1316_v30 = vld [vmem:[#allocation2] sm:$0xff] }
 0x429   :  { %v1117_v3 = vpop.permute.xlu1 %1116  ;;  %v1141_v4 = vpop.permute.xlu0 %1140 }
 0x42a   :  { %1122 = vst.msk [vmem:[#allocation2 + $0x10] sm:$0xff] %vm180_vm2, %v1117_v3  ;;  %1146 = vst.msk [vmem:[#allocation2 + $0x40] sm:$0xff] %vm180_vm2, %v1141_v4 }
 0x42d   :  { %v1125_v5 = vpop.permute.xlu1 %1124  ;;  %v1149_v6 = vpop.permute.xlu0 %1148 }
 0x42e   :  { %1130 = vst.msk [vmem:[#allocation2 + $0x20] sm:$0xff] %vm180_vm2, %v1125_v5  ;;  %1154 = vst.msk [vmem:[#allocation2 + $0x50] sm:$0xff] %vm180_vm2, %v1149_v6  ;;  %v2071_v5 = vld [vmem:[%s2662_s3 + $0x3c] ss:$28 sps:$4 sm:$0xff]  }
 0x431   :  { %v1265_v27 = vpop.permute.xlu1 %1264  ;;  %v1157_v24 = vpop.permute.xlu0 %1156  ;;  %v1324_v7 = vld [vmem:[#allocation2 + $0x40] sm:$0xff]  ;;  %v1318_v28 = vld [vmem:[#allocation2 + $0x10] sm:$0xff] }
 0x432   :  { %1270 = vst.msk [vmem:[#allocation2 + $0x140] sm:$0xff] %vm180_vm2, %v1265_v27  ;;  %1162 = vst.msk [vmem:[#allocation2 + $0x60] sm:$0xff] %vm180_vm2, %v1157_v24  ;;  %1913 = vmatprep.subr.bf16.mxu0 %v1324_v7  ;;  %v1348_v27 = vld [vmem:[#allocation2 + $0x100] sm:$0xff]  ;;  %v1308_v24 = vld [vmem:[%s2662_s3 + $0x38] sm:$0xff] }
 0x433   :  { %1914 = vmatpush3.bf16.msra.mxu0 %v1316_v30 }
 0x435   :  { %v1273_v33 = vpop.permute.xlu1 %1272  ;;  %v1165_v8 = vpop.permute.xlu0 %1164  ;;  %v1326_v22 = vld [vmem:[#allocation2 + $0x50] sm:$0xff]  ;;  %v1320_v41 = vld [vmem:[#allocation2 + $0x20] sm:$0xff] }
 0x436   :  { %1278 = vst.msk [vmem:[#allocation2 + $0x150] sm:$0xff] %vm180_vm2, %v1273_v33  ;;  %1170 = vst.msk [vmem:[#allocation2 + $0x70] sm:$0xff] %vm180_vm2, %v1165_v8  ;;  %v1312_v33 = vld [vmem:[%s2662_s3 + $0x54] sm:$0xff] }
 0x439   :  { %v1133_v9 = vpop.permute.xlu0 %1132  ;;  %v1203_v10 = vpop.permute.xlu1 %1202  ;;  %v1328_v38 = vld [vmem:[#allocation2 + $0x60] sm:$0xff] }
 0x43a   :  { %1138 = vst.msk [vmem:[#allocation2 + $0x30] sm:$0xff] %vm180_vm2, %v1133_v9  ;;  %1208 = vst.msk [vmem:[#allocation2 + $0xc0] sm:$0xff] %vm180_vm2, %v1203_v10  ;;  %v1356_v0 = vld [vmem:[#allocation2 + $0x140] sm:$0xff] }
 0x43d   :  { %v1211_v12 = vpop.permute.xlu0 %1210  ;;  %v1143_v14 = vpop.permute.xlu1 %1142  ;;  %v1330_v35 = vld [vmem:[#allocation2 + $0x70] sm:$0xff] }
 0x43e   :  { %1216 = vst.msk [vmem:[#allocation2 + $0xd0] sm:$0xff] %vm180_vm2, %v1211_v12  ;;  %1147 = vst.msk [vmem:[#allocation2 + $0x48] sm:$0xff] %vm180_vm2, %v1143_v14  ;;  %v1349_v12 = vld [vmem:[#allocation2 + $0x108] sm:$0xff]  ;;  %v1808_v14 = vcombine.low %v1308_v24, %v1312_v33 }
 0x441   :  { %v1179_v44 = vpop.permute.xlu0 %1178  ;;  %v1241_v54 = vpop.permute.xlu1 %1240  ;;  %v1340_v55 = vld [vmem:[#allocation2 + $0xc0] sm:$0xff]  ;;  %v1322_v52 = vld [vmem:[#allocation2 + $0x30] sm:$0xff] }
 0x442   :  { %1184 = vst.msk [vmem:[#allocation2 + $0x90] sm:$0xff] %vm180_vm2, %v1179_v44  ;;  %1246 = vst.msk [vmem:[#allocation2 + $0x110] sm:$0xff] %vm180_vm2, %v1241_v54  ;;  %1941 = vmatprep.subr.bf16.mxu1 %v1340_v55  ;;  %v1358_v54 = vld [vmem:[#allocation2 + $0x150] sm:$0xff] }
 0x443   :  { %1942 = vmatpush3.bf16.msra.mxu1 %v1332_v61 }
 0x445   :  { %v1219_v15 = vpop.permute.xlu0 %1218  ;;  %v1119_v16 = vpop.permute.xlu1 %1118  ;;  %v1325_v18 = vld [vmem:[#allocation2 + $0x48] sm:$0xff]  ;;  %v1342_v63 = vld [vmem:[#allocation2 + $0xd0] sm:$0xff] }
 0x446   :  { %1224 = vst.msk [vmem:[#allocation2 + $0xe0] sm:$0xff] %vm180_vm2, %v1219_v15  ;;  %1123 = vst.msk [vmem:[#allocation2 + $0x18] sm:$0xff] %vm180_vm2, %v1119_v16  ;;  %1915 = vmatprep.subr.bf16.mxu0 %v1325_v18 }
 0x447   :  { %1916 = vmatpush3.bf16.msra.mxu0 %v1317_v21 }
 0x448   :  { %1917 = vmatprep.subr.bf16.mxu0 %v1326_v22 }
 0x449   :  { %v1151_v23 = vpop.permute.xlu0 %1150  ;;  %v1127_v26 = vpop.permute.xlu1 %1126  ;;  %v1334_v6 = vld [vmem:[#allocation2 + $0x90] sm:$0xff] }
 0x44a   :  { %1155 = vst.msk [vmem:[#allocation2 + $0x58] sm:$0xff] %vm180_vm2, %v1151_v23  ;;  %1131 = vst.msk [vmem:[#allocation2 + $0x28] sm:$0xff] %vm180_vm2, %v1127_v26  ;;  %v1350_v16 = vld [vmem:[#allocation2 + $0x110] sm:$0xff] }
 0x44b   :  { %1918 = vmatpush3.bf16.msra.mxu0 %v1318_v28  ;;  %v2100_v28 = vld [vmem:[%s2662_s3 + $0x14] ss:$28 sps:$4 sm:$0xff]  }
 0x44d   :  { %v1187_v29 = vpop.permute.xlu0 %1186  ;;  %v1167_v31 = vpop.permute.xlu1 %1166  ;;  %v1319_v37 = vld [vmem:[#allocation2 + $0x18] sm:$0xff]  ;;  %v1344_v44 = vld [vmem:[#allocation2 + $0xe0] sm:$0xff] }
 0x44e   :  { %1192 = vst.msk [vmem:[#allocation2 + $0xa0] sm:$0xff] %vm180_vm2, %v1187_v29  ;;  %1171 = vst.msk [vmem:[#allocation2 + $0x78] sm:$0xff] %vm180_vm2, %v1167_v31 }
 0x451   :  { %v1159_v32 = vpop.permute.xlu0 %1158  ;;  %v1135_v34 = vpop.permute.xlu1 %1134  ;;  %v1327_v36 = vld [vmem:[#allocation2 + $0x58] sm:$0xff]  ;;  %v1321_v45 = vld [vmem:[#allocation2 + $0x28] sm:$0xff] }
 0x452   :  { %1163 = vst.msk [vmem:[#allocation2 + $0x68] sm:$0xff] %vm180_vm2, %v1159_v32  ;;  %1139 = vst.msk [vmem:[#allocation2 + $0x38] sm:$0xff] %vm180_vm2, %v1135_v34  ;;  %1919 = vmatprep.subr.bf16.mxu0 %v1327_v36 }
 0x453   :  { %1920 = vmatpush3.bf16.msra.mxu0 %v1319_v37 }
 0x454   :  { %1921 = vmatprep.subr.bf16.mxu0 %v1328_v38 }
 0x455   :  { %v1267_v39 = vpop.permute.xlu0 %1266  ;;  %v1275_v40 = vpop.permute.xlu1 %1274  ;;  %v1331_v53 = vld [vmem:[#allocation2 + $0x78] sm:$0xff]  ;;  %v1336_v15 = vld [vmem:[#allocation2 + $0xa0] sm:$0xff] }
 0x456   :  { %1271 = vst.msk [vmem:[#allocation2 + $0x148] sm:$0xff] %vm180_vm2, %v1267_v39  ;;  %1279 = vst.msk [vmem:[#allocation2 + $0x158] sm:$0xff] %vm180_vm2, %v1275_v40 }
 0x457   :  { %1922 = vmatpush3.bf16.msra.mxu0 %v1320_v41 }
 0x459   :  { %v1243_v42 = vpop.permute.xlu1 %1242  ;;  %v1205_v43 = vpop.permute.xlu0 %1204  ;;  %v1329_v2 = vld [vmem:[#allocation2 + $0x68] sm:$0xff]  ;;  %v1323_v59 = vld [vmem:[#allocation2 + $0x38] sm:$0xff] }
 0x45a   :  { %1247 = vst.msk [vmem:[#allocation2 + $0x118] sm:$0xff] %vm180_vm2, %v1243_v42  ;;  %1209 = vst.msk [vmem:[#allocation2 + $0xc8] sm:$0xff] %vm180_vm2, %v1205_v43  ;;  %1923 = vmatprep.subr.bf16.mxu0 %v1329_v2 }
 0x45b   :  { %1924 = vmatpush3.bf16.msra.mxu0 %v1321_v45  ;;  %v1364_v45 = vld [vmem:[#allocation2 + $0x180] sm:$0xff] }
 0x45c   :  { %1925 = vmatprep.subr.bf16.mxu0 %v1330_v35 }
 0x45d   :  { %v1213_v50 = vpop.permute.xlu1 %1212  ;;  %v1227_v51 = vpop.permute.xlu0 %1226  ;;  %v1357_v30 = vld [vmem:[#allocation2 + $0x148] sm:$0xff]  ;;  %v1359_v21 = vld [vmem:[#allocation2 + $0x158] sm:$0xff] }
 0x45e   :  { %1217 = vst.msk [vmem:[#allocation2 + $0xd8] sm:$0xff] %vm180_vm2, %v1213_v50  ;;  %1232 = vst.msk [vmem:[#allocation2 + $0xf0] sm:$0xff] %vm180_vm2, %v1227_v51 }
 0x45f   :  { %1926 = vmatpush3.bf16.msra.mxu0 %v1322_v52 }
 0x460   :  { %1927 = vmatprep.subr.bf16.mxu0 %v1331_v53  ;;  %v1365_v53 = vld [vmem:[#allocation2 + $0x188] sm:$0xff] }
 0x461   :  { %v1181_v56 = vpop.permute.xlu1 %1180  ;;  %v1195_v57 = vpop.permute.xlu0 %1194  ;;  %v1341_v58 = vld [vmem:[#allocation2 + $0xc8] sm:$0xff]  ;;  %v1351_v29 = vld [vmem:[#allocation2 + $0x118] sm:$0xff] }
 0x462   :  { %1185 = vst.msk [vmem:[#allocation2 + $0x98] sm:$0xff] %vm180_vm2, %v1181_v56  ;;  %1200 = vst.msk [vmem:[#allocation2 + $0xb0] sm:$0xff] %vm180_vm2, %v1195_v57  ;;  %1943 = vmatprep.subr.bf16.mxu1 %v1341_v58  ;;  %v465_v56 = vsub.s32 6, %v2392_v1 }
 0x463   :  { %1928 = vmatpush3.bf16.msra.mxu0 %v1323_v59  ;;  %1944 = vmatpush3.bf16.msra.mxu1 %v1333_v60 }
 0x464   :  { %1945 = vmatprep.subr.bf16.mxu1 %v1342_v63  ;;  %1969 = vmatprep.subr.bf16.mxu0 %v1356_v0  ;;  %v466_v63 = vrot.slane %v2398_v25, %v465_v56 }
 0x465   :  { %v1281_v3 = vpop.permute.xlu1 %1280  ;;  %v1221_v4 = vpop.permute.xlu0 %1220  ;;  %v1343_v7 = vld [vmem:[#allocation2 + $0xd8] sm:$0xff]  ;;  %v1346_v31 = vld [vmem:[#allocation2 + $0xf0] sm:$0xff] }
 0x466   :  { %1286 = vst.msk [vmem:[#allocation2 + $0x160] sm:$0xff] %vm180_vm2, %v1281_v3  ;;  %1225 = vst.msk [vmem:[#allocation2 + $0xe8] sm:$0xff] %vm180_vm2, %v1221_v4  ;;  %1491 = vmatmul.mubr.bf16.vlgmr.msra.gmra.mrb[28].mxu0 %v2068_v62  ;;  %v2075_v62 = vld [vmem:[%s2662_s3 + $0x18] ss:$28 sps:$4 sm:$0xff]  }
 0x467   :  { %1946 = vmatpush3.bf16.msra.mxu1 %v1334_v6  ;;  %1970 = vmatpush3.bf16.msra.mxu0 %v1348_v27 }
 0x468   :  { %1947 = vmatprep.subr.bf16.mxu1 %v1343_v7  ;;  %1971 = vmatprep.subr.bf16.mxu0 %v1357_v30 }
 0x469   :  { %v1249_v8 = vpop.permute.xlu1 %1248  ;;  %v1189_v9 = vpop.permute.xlu0 %1188  ;;  %v1335_v10 = vld [vmem:[#allocation2 + $0x98] sm:$0xff]  ;;  %1498 = vmatprep.mubr.bf16.mxu0 %v2071_v5  ;;  %v1338_v37 = vld [vmem:[#allocation2 + $0xb0] sm:$0xff] }
 0x46a   :  { %1254 = vst.msk [vmem:[#allocation2 + $0x120] sm:$0xff] %vm180_vm2, %v1249_v8  ;;  %1193 = vst.msk [vmem:[#allocation2 + $0xa8] sm:$0xff] %vm180_vm2, %v1189_v9 }
 0x46b   :  { %1948 = vmatpush3.bf16.msra.mxu1 %v1335_v10  ;;  %1972 = vmatpush3.bf16.msra.mxu0 %v1349_v12 }
 0x46c   :  { %1949 = vmatprep.subr.bf16.mxu1 %v1344_v44  ;;  %1973 = vmatprep.subr.bf16.mxu0 %v1358_v54 }
 0x46d   :  { %v1283_v55 = vpop.permute.xlu1 %1282  ;;  %v1229_v61 = vpop.permute.xlu0 %1228  ;;  %v1345_v18 = vld [vmem:[#allocation2 + $0xe8] sm:$0xff]  ;;  %v1360_v32 = vld [vmem:[#allocation2 + $0x160] sm:$0xff] }
 0x46e   :  { %1287 = vst.msk [vmem:[#allocation2 + $0x168] sm:$0xff] %vm180_vm2, %v1283_v55  ;;  %1233 = vst.msk [vmem:[#allocation2 + $0xf8] sm:$0xff] %vm180_vm2, %v1229_v61  ;;  %1499 = vmatmul.mubr.bf16.gmra.mrb[32].mxu0 %v1808_v14 }
 0x46f   :  { %1950 = vmatpush3.bf16.msra.mxu1 %v1336_v15  ;;  %1974 = vmatpush3.bf16.msra.mxu0 %v1350_v16 }
 0x470   :  { %1951 = vmatprep.subr.bf16.mxu1 %v1345_v18  ;;  %1975 = vmatprep.subr.bf16.mxu0 %v1359_v21 }
 0x471   :  { %v1251_v22 = vpop.permute.xlu1 %1250  ;;  %v1197_v23 = vpop.permute.xlu0 %1196  ;;  %v1337_v26 = vld [vmem:[#allocation2 + $0xa8] sm:$0xff]  ;;  %1588 = vmatprep.mubr.bf16.mxu0 %v2100_v28  ;;  %v1352_v38 = vld [vmem:[#allocation2 + $0x120] sm:$0xff] }
 0x472   :  { %1255 = vst.msk [vmem:[#allocation2 + $0x128] sm:$0xff] %vm180_vm2, %v1251_v22  ;;  %1201 = vst.msk [vmem:[#allocation2 + $0xb8] sm:$0xff] %vm180_vm2, %v1197_v23 }
 0x473   :  { %1952 = vmatpush3.bf16.msra.mxu1 %v1337_v26  ;;  %1976 = vmatpush3.bf16.msra.mxu0 %v1351_v29 }
 0x474   :  { %1953 = vmatprep.subr.bf16.mxu1 %v1346_v31  ;;  %1977 = vmatprep.subr.bf16.mxu0 %v1360_v32 }
 0x475   :  { %v1257_v34 = vpop.permute.xlu1 %1256  ;;  %v1289_v36 = vpop.permute.xlu0 %1288  ;;  %v1347_v39 = vld [vmem:[#allocation2 + $0xf8] sm:$0xff]  ;;  %v1361_v40 = vld [vmem:[#allocation2 + $0x168] sm:$0xff] }
 0x476   :  { %1262 = vst.msk [vmem:[#allocation2 + $0x130] sm:$0xff] %vm180_vm2, %v1257_v34  ;;  %1294 = vst.msk [vmem:[#allocation2 + $0x170] sm:$0xff] %vm180_vm2, %v1289_v36 }
 0x477   :  { %1954 = vmatpush3.bf16.msra.mxu1 %v1338_v37  ;;  %1978 = vmatpush3.bf16.msra.mxu0 %v1352_v38 }
 0x478   :  { %1955 = vmatprep.subr.bf16.mxu1 %v1347_v39  ;;  %1979 = vmatprep.subr.bf16.mxu0 %v1361_v40 }
 0x479   :  { %v1259_v41 = vpop.permute.xlu1 %1258  ;;  %v1291_v42 = vpop.permute.xlu0 %1290  ;;  %v1339_v43 = vld [vmem:[#allocation2 + $0xb8] sm:$0xff]  ;;  %v1353_v2 = vld [vmem:[#allocation2 + $0x128] sm:$0xff] }
 0x47a   :  { %1263 = vst.msk [vmem:[#allocation2 + $0x138] sm:$0xff] %vm180_vm2, %v1259_v41  ;;  %1295 = vst.msk [vmem:[#allocation2 + $0x178] sm:$0xff] %vm180_vm2, %v1291_v42 }
 0x47b   :  { %1956 = vmatpush3.bf16.msra.mxu1 %v1339_v43  ;;  %1980 = vmatpush3.bf16.msra.mxu0 %v1353_v2 }
 0x47c   :  { %2017 = vmatprep.subr.bf16.mxu1 %v1364_v45 }
 0x47d   :  { %v2562_v35 = vpop.permute.xlu1 %1442  ;;  %v2564_v50 = vpop.permute.xlu0 %1440  ;;  %v1362_v51 = vld [vmem:[#allocation2 + $0x170] sm:$0xff] }
 0x47e   :  { %v1354_v52 = vld [vmem:[#allocation2 + $0x130] sm:$0xff]  ;;  %1540 = vmatmul.mubr.bf16.vlgmr.msra.gmra.mrb[36].mxu1 %v2335_v11  ;;  %1981 = vmatprep.subr.bf16.mxu0 %v1362_v51  ;;  %v2073_v11 = vld [vmem:[%s2662_s3 + $0x4c] ss:$28 sps:$4 sm:$0xff]  }
 0x47f   :  { %1982 = vmatpush3.bf16.msra.mxu0 %v1354_v52  ;;  %2018 = vmatpush3.bf16.msra.mxu1 %v1364_v45 }
 0x480   :  { %2019 = vmatprep.subr.bf16.mxu1 %v1365_v53  ;;  %1547 = vmatprep.mubr.bf16.mxu1 %v2340_v13 }
 0x481   :  { %v2569_v57 = vpop.permute.xlu1 %1446  ;;  %v2571_v58 = vpop.permute.xlu0 %1444  ;;  %v1363_v59 = vld [vmem:[#allocation2 + $0x178] sm:$0xff] }
 0x482   :  { %v1355_v60 = vld [vmem:[#allocation2 + $0x138] sm:$0xff]  ;;  %1983 = vmatprep.subr.bf16.mxu0 %v1363_v59 }
 0x483   :  { %1984 = vmatpush3.bf16.msra.mxu0 %v1355_v60  ;;  %2020 = vmatpush3.bf16.msra.mxu1 %v1365_v53  ;;  %v512_v53 = vsub.s32 7, %v2392_v1 }
 0x485   :  { %v398_v13 = vpop.permute.xlu1 %397  ;;  %v396_v0 = vpop.permute.xlu0 %395 }
 0x486   :  { %v452_v3 = vadd.f32 %v2390_v49, %v398_v13  ;;  %v449_v4 = vadd.f32 %v2386_v47, %v396_v0  ;;  %1548 = vmatmul.mubr.bf16.gmra.mrb[40].mxu1 %v2352_v20  ;;  %1589 = vmatmul.mubr.bf16.vlgmr.msra.gmra.mrb[36].mxu0 %v2347_v19  ;;  %v2076_v47 = vld [vmem:[%s2662_s3 + $0x48] ss:$28 sps:$4 sm:$0xff]   ;;  %v2077_v19 = vld [vmem:[%s2662_s3 + $0x50] ss:$28 sps:$4 sm:$0xff]  }
 0x487   :  { %1596 = vmatprep.mubr.bf16.mxu0 %v2073_v11  ;;  %2021 = vmatprep.mubr.msk.bf16.mxu1 %vm407_vm3, %v2075_v62  ;;  %v25_v62 = vld [vmem:[%s2665_s5 + $0x8] sm:$0x1] }
 0x488   :  { %v468_v5 = vadd.f32 %v466_v63, %v452_v3  ;;  %v467_v6 = vadd.f32 %v466_v63, %v449_v4 }
 0x489   :  { %v402_v27 = vpop.permute.xlu1 %401  ;;  %v400_v24 = vpop.permute.xlu0 %399 }
 0x48a   :  { %v472_v7 = vsel %vm180_vm2, %v468_v5, 0.0  ;;  %v487_v30 = vmul.f32 %v468_v5, %v468_v5  ;;  %v471_v33 = vsel %vm180_vm2, %v467_v6, 0.0  ;;  %v486_v8 = vmul.f32 %v467_v6, %v467_v6 }
 0x48b   :  { %v473_v20 = vadd.f32 %v472_v7, %v471_v33  ;;  %v460_v49 = vadd.f32 %v2388_v48, %v402_v27  ;;  %v457_v9 = vadd.f32 %v2384_v46, %v400_v24 }
 0x48c   :  { %v491_v10 = vsel %vm180_vm2, %v487_v30, 0.0  ;;  %v490_v12 = vsel %vm180_vm2, %v486_v8, 0.0 }
 0x48d   :  { %v492_v14 = vadd.f32 %v491_v10, %v490_v12  ;;  %v470_v44 = vadd.f32 %v466_v63, %v460_v49  ;;  %v469_v54 = vadd.f32 %v466_v63, %v457_v9 }
 0x48e   :  { %1597 = vmatmul.mubr.bf16.gmra.mrb[40].mxu0 %v2076_v47  ;;  %2022 = vmatmul.mubr.msk.bf16.vlgmr.msra.gmra.mrb[44].mxu1 %vm407_vm3, %v2077_v19 }
 0x48f   :  { %v489_v55 = vmul.f32 %v470_v44, %v470_v44  ;;  %v474_v61 = vsel %vm180_vm2, %v469_v54, 0.0  ;;  %v488_v15 = vmul.f32 %v469_v54, %v469_v54  ;;  %v476_v18 = vsel %vm180_vm2, %v470_v44, 0.0 }
 0x490   :  { %v475_v16 = vadd.f32 %v474_v61, %v473_v20 }
 0x491   :  { %v493_v48 = vsel %vm180_vm2, %v488_v15, 0.0  ;;  %v495_v22 = vsel %vm180_vm2, %v489_v55, 0.0 }
 0x492   :  { %v477_v46 = vadd.f32 %v476_v18, %v475_v16  ;;  %v494_v21 = vadd.f32 %v493_v48, %v492_v14 }
 0x494   :  { %v478_v23 = vrot.slane %v477_v46, 4  ;;  %v496_v26 = vadd.f32 %v495_v22, %v494_v21 }
 0x496   :  { %v479_v28 = vadd.f32 %v478_v23, %v477_v46  ;;  %v497_v29 = vrot.slane %v496_v26, 4 }
 0x498   :  { %v480_v31 = vrot.slane %v479_v28, 2  ;;  %v498_v32 = vadd.f32 %v497_v29, %v496_v26 }
 0x49a   :  { %v481_v34 = vadd.f32 %v480_v31, %v479_v28  ;;  %v499_v36 = vrot.slane %v498_v32, 2 }
 0x49c   :  { %v482_v37 = vrot.slane %v481_v34, 1  ;;  %v500_v38 = vadd.f32 %v499_v36, %v498_v32 }
 0x49e   :  { %v483_v39 = vadd.f32 %v482_v37, %v481_v34  ;;  %v501_v40 = vrot.slane %v500_v38, 1 }
 0x4a0   :  { %v485_v41 = vmul.f32 0.03125, %v483_v39  ;;  %v502_v42 = vadd.f32 %v501_v40, %v500_v38  ;;  %v1656_v39 = vsub.s32 3, %v2392_v1 }
 0x4a2   :  { %v503_v43 = vmul.f32 0.03125, %v502_v42  ;;  %v504_v2 = vmul.f32 %v485_v41, %v485_v41 }
 0x4a4   :  { %v505_v45 = vsub.f32 %v503_v43, %v504_v2 }
 0x4a6   :  { %v506_v51 = vmax.f32 %v505_v45, 0.0 }
 0x4a8   :  { %v507_v52 = vadd.f32 1e-05, %v506_v51 }
 0x4aa   :  { %2088 = vrsqrt.f32 %v507_v52 }
 0x4b4   :  { %v2089_v56 = vpop.eup %2088 }
 0x4b5   :  { %v509_v59 = vmul.f32 %v2089_v56, %v2398_v25 }
 0x4b7   :  { %v513_v60 = vrot.slane %v509_v59, %v512_v53  ;;  %v518_v11 = vmul.f32 %v509_v59, %v485_v41 }
 0x4b9   :  { %v514_v63 = vmul.f32 %v513_v60, %v467_v6  ;;  %v516_v13 = vmul.f32 %v513_v60, %v469_v54  ;;  %v517_v0 = vmul.f32 %v513_v60, %v470_v44  ;;  %v520_v3 = vrot.slane %v518_v11, 7 }
 0x4ba   :  { %v515_v4 = vmul.f32 %v513_v60, %v468_v5 }
 0x4bb   :  { %v522_v27 = vsub.f32 %v25_v62, %v520_v3 }
 0x4bd   :  { %v526_v24 = vrot.slane %v522_v27, %v525_v17 }
 0x4bf   :  { %v2609_v7 = vadd.f32 %v526_v24, %v514_v63  ;;  %v2611_v30 = vadd.f32 %v526_v24, %v516_v13  ;;  %v2613_v25 = vadd.f32 %v526_v24, %v517_v0  ;;  %v2615_v33 = vadd.f32 %v526_v24, %v515_v4 }
 0x539   :  { %v1929_v8 = vpop.f32.mrb[28].mxu0 }
 0x53a   :  { %v1930_v47 = vpop.f32.mrb[29].mxu0 }
 0x53b   :  { %v1931_v19 = vadd.f32 %v1930_v47, %v1929_v8  ;;  %v1932_v6 = vpop.f32.mrb[30].mxu0 }
 0x53c   :  { %v1933_v20 = vpop.f32.mrb[31].mxu0 }
 0x53d   :  { %v1934_v49 = vadd.f32 %v1933_v20, %v1932_v6  ;;  %v1493_v55 = vadd.f32 %v1931_v19, %v2564_v50 }
 0x53f   :  { %v1496_v18 = vadd.f32 %v1934_v49, %v2562_v35 }
 0x541   :  { %v1935_v9 = vpop.f32.mrb[32].mxu0 }
 0x542   :  { %v1936_v5 = vpop.f32.mrb[33].mxu0 }
 0x543   :  { %v1937_v10 = vadd.f32 %v1936_v5, %v1935_v9  ;;  %v1938_v12 = vpop.f32.mrb[34].mxu0 }
 0x544   :  { %v1939_v14 = vpop.f32.mrb[35].mxu0 }
 0x545   :  { %v1940_v17 = vadd.f32 %v1939_v14, %v1938_v12  ;;  %v1501_v29 = vadd.f32 %v1937_v10, %v2571_v58  ;;  %v2625_v58 = vld [vmem:[%s2665_s5] sm:$0xff] }
 0x546   :  { %v1657_v52 = vrot.slane %v2625_v58, %v1656_v39 }
 0x547   :  { %v1504_v50 = vadd.f32 %v1940_v17, %v2569_v57 }
 0x551   :  { %v1957_v44 = vpop.f32.mrb[36].mxu1 }
 0x552   :  { %v1958_v54 = vpop.f32.mrb[37].mxu1 }
 0x553   :  { %v1959_v61 = vadd.f32 %v1958_v54, %v1957_v44  ;;  %v1960_v15 = vpop.f32.mrb[38].mxu1 }
 0x554   :  { %v1961_v16 = vpop.f32.mrb[39].mxu1 }
 0x555   :  { %v1542_v48 = vadd.f32 %v1959_v61, %v1493_v55  ;;  %v1962_v46 = vadd.f32 %v1961_v16, %v1960_v15 }
 0x557   :  { %v1545_v21 = vadd.f32 %v1962_v46, %v1496_v18 }
 0x559   :  { %v1963_v22 = vpop.f32.mrb[40].mxu1  ;;  %v1985_v23 = vpop.f32.mrb[36].mxu0 }
 0x55a   :  { %v1964_v26 = vpop.f32.mrb[41].mxu1  ;;  %v1986_v28 = vpop.f32.mrb[37].mxu0 }
 0x55b   :  { %v1965_v31 = vadd.f32 %v1964_v26, %v1963_v22  ;;  %v1987_v32 = vadd.f32 %v1986_v28, %v1985_v23  ;;  %v1966_v34 = vpop.f32.mrb[42].mxu1  ;;  %v1988_v36 = vpop.f32.mrb[38].mxu0 }
 0x55c   :  { %v1967_v37 = vpop.f32.mrb[43].mxu1  ;;  %v1989_v38 = vpop.f32.mrb[39].mxu0 }
 0x55d   :  { %v1550_v35 = vadd.f32 %v1965_v31, %v1501_v29  ;;  %v1968_v40 = vadd.f32 %v1967_v37, %v1966_v34  ;;  %v1990_v41 = vadd.f32 %v1989_v38, %v1988_v36  ;;  %v1591_v42 = vadd.f32 %v1987_v32, %v1542_v48 }
 0x55f   :  { %v1553_v43 = vadd.f32 %v1968_v40, %v1504_v50  ;;  %v1594_v2 = vadd.f32 %v1990_v41, %v1545_v21 }
 0x561   :  { %v1991_v45 = vpop.f32.mrb[40].mxu0  ;;  %v2023_v51 = vpop.f32.mrb[44].mxu1 }
 0x562   :  { %v1992_v57 = vpop.f32.mrb[41].mxu0  ;;  %v1639_v53 = vpop.f32.mrb[45].mxu1 }
 0x563   :  { %v1993_v56 = vadd.f32 %v1992_v57, %v1991_v45  ;;  %v1640_v59 = vadd.f32 %v1639_v53, %v1591_v42  ;;  %v1994_v60 = vpop.f32.mrb[42].mxu0  ;;  %v2024_v11 = vpop.f32.mrb[46].mxu1 }
 0x564   :  { %v1995_v62 = vpop.f32.mrb[43].mxu0  ;;  %v1642_v63 = vpop.f32.mrb[47].mxu1 }
 0x565   :  { %v1599_v13 = vadd.f32 %v1993_v56, %v1550_v35  ;;  %v1658_v0 = vadd.f32 %v1657_v52, %v1640_v59  ;;  %v1996_v3 = vadd.f32 %v1995_v62, %v1994_v60  ;;  %v1643_v4 = vadd.f32 %v1642_v63, %v1594_v2 }
 0x566   :  { %v1702_v2 = vsub.s32 4, %v2392_v1  ;;  %v1715_v62 = vsub.s32 5, %v2392_v1 }
 0x567   :  { %v1648_v27 = vadd.f32 %v2023_v51, %v1599_v13  ;;  %v1602_v24 = vadd.f32 %v1996_v3, %v1553_v43  ;;  %v1676_v8 = vmul.f32 %v1658_v0, %v1658_v0  ;;  %v1659_v47 = vadd.f32 %v1657_v52, %v1643_v4 }
 0x568   :  { %v1662_v20 = vsel %vm180_vm2, %v1658_v0, 0.0 }
 0x569   :  { %v1660_v19 = vadd.f32 %v1657_v52, %v1648_v27  ;;  %v1651_v6 = vadd.f32 %v2024_v11, %v1602_v24  ;;  %v1663_v49 = vsel %vm180_vm2, %v1659_v47, 0.0  ;;  %v1677_v9 = vmul.f32 %v1659_v47, %v1659_v47 }
 0x56a   :  { %v1664_v12 = vadd.f32 %v1663_v49, %v1662_v20  ;;  %v1680_v17 = vsel %vm180_vm2, %v1676_v8, 0.0 }
 0x56b   :  { %v1678_v5 = vmul.f32 %v1660_v19, %v1660_v19  ;;  %v1661_v10 = vadd.f32 %v1657_v52, %v1651_v6  ;;  %v1665_v14 = vsel %vm180_vm2, %v1660_v19, 0.0  ;;  %v1681_v44 = vsel %vm180_vm2, %v1677_v9, 0.0 }
 0x56c   :  { %v1666_v61 = vadd.f32 %v1665_v14, %v1664_v12  ;;  %v1682_v15 = vadd.f32 %v1681_v44, %v1680_v17 }
 0x56d   :  { %v1667_v54 = vsel %vm180_vm2, %v1661_v10, 0.0  ;;  %v1679_v55 = vmul.f32 %v1661_v10, %v1661_v10  ;;  %v1683_v16 = vsel %vm180_vm2, %v1678_v5, 0.0 }
 0x56e   :  { %v1668_v48 = vadd.f32 %v1667_v54, %v1666_v61  ;;  %v1684_v46 = vadd.f32 %v1683_v16, %v1682_v15 }
 0x56f   :  { %v1685_v18 = vsel %vm180_vm2, %v1679_v55, 0.0 }
 0x570   :  { %v1669_v21 = vrot.slane %v1668_v48, 4  ;;  %v1686_v22 = vadd.f32 %v1685_v18, %v1684_v46 }
 0x572   :  { %v1670_v23 = vadd.f32 %v1669_v21, %v1668_v48  ;;  %v1687_v26 = vrot.slane %v1686_v22, 4 }
 0x574   :  { %v1671_v28 = vrot.slane %v1670_v23, 2  ;;  %v1688_v29 = vadd.f32 %v1687_v26, %v1686_v22 }
 0x576   :  { %v1672_v31 = vadd.f32 %v1671_v28, %v1670_v23  ;;  %v1689_v32 = vrot.slane %v1688_v29, 2 }
 0x578   :  { %v1673_v34 = vrot.slane %v1672_v31, 1  ;;  %v1690_v36 = vadd.f32 %v1689_v32, %v1688_v29 }
 0x57a   :  { %v1674_v50 = vadd.f32 %v1673_v34, %v1672_v31  ;;  %v1691_v37 = vrot.slane %v1690_v36, 1 }
 0x57c   :  { %v1675_v38 = vmul.f32 0.03125, %v1674_v50  ;;  %v1692_v39 = vadd.f32 %v1691_v37, %v1690_v36 }
 0x57e   :  { %v1693_v35 = vmul.f32 0.03125, %v1692_v39  ;;  %v1694_v40 = vmul.f32 %v1675_v38, %v1675_v38 }
 0x580   :  { %v1695_v41 = vsub.f32 %v1693_v35, %v1694_v40 }
 0x582   :  { %v1696_v42 = vmax.f32 %v1695_v41, 0.0 }
 0x584   :  { %v1697_v43 = vadd.f32 1e-05, %v1696_v42 }
 0x586   :  { %2090 = vrsqrt.f32 %v1697_v43 }
 0x590   :  { %v2091_v45 = vpop.eup %2090 }
 0x591   :  { %v1699_v51 = vmul.f32 %v2625_v58, %v2091_v45 }
 0x593   :  { %v1703_v52 = vrot.slane %v1699_v51, %v1702_v2  ;;  %v1708_v57 = vmul.f32 %v1699_v51, %v1675_v38 }
 0x595   :  { %v1704_v53 = vmul.f32 %v1703_v52, %v1658_v0  ;;  %v1705_v56 = vmul.f32 %v1703_v52, %v1659_v47  ;;  %v1706_v59 = vmul.f32 %v1703_v52, %v1660_v19  ;;  %v1707_v60 = vmul.f32 %v1703_v52, %v1661_v10 }
 0x596   :  { %v1710_v11 = vrot.slane %v1708_v57, 7 }
 0x598   :  { %v1712_v63 = vsub.f32 %v2625_v58, %v1710_v11 }
 0x59a   :  { %v1716_v13 = vrot.slane %v1712_v63, %v1715_v62 }
 0x59c   :  { %v1717_v3 = vadd.f32 %v1716_v13, %v1704_v53  ;;  %v1718_v4 = vadd.f32 %v1716_v13, %v1705_v56  ;;  %v1719_v27 = vadd.f32 %v1716_v13, %v1706_v59  ;;  %v1720_v24 = vadd.f32 %v1716_v13, %v1707_v60 }
 0x59e   :  { %v1721_v8 = vadd.f32 %v1717_v3, %v2609_v7  ;;  %v1722_v6 = vadd.f32 %v1718_v4, %v2615_v33  ;;  %v1723_v20 = vadd.f32 %v1719_v27, %v2611_v30  ;;  %v1724_v0 = vadd.f32 %v1720_v24, %v2613_v25 }
 0x5a0   :  { %v1729_v47 = vmin.f32 %v1721_v8, 0.0  ;;  %v1730_v19 = vmin.f32 %v1722_v6, 0.0  ;;  %v1731_v49 = vmin.f32 %v1723_v20, 0.0  ;;  %v1732_v9 = vmin.f32 %v1724_v0, 0.0 }
 0x5a1   :  { %vm1725_vm8 = vcmp.gt.f32.partialorder %v1721_v8, 0.0  ;;  %vm1726_vm9 = vcmp.gt.f32.partialorder %v1722_v6, 0.0  ;;  %vm1727_vm10 = vcmp.gt.f32.partialorder %v1723_v20, 0.0  ;;  %vm1728_vm11 = vcmp.gt.f32.partialorder %v1724_v0, 0.0 }
 0x5a2   :  { %v1733_v1 = vmul.f32 1.442695, %v1729_v47  ;;  %v1735_v5 = vmul.f32 1.442695, %v1730_v19  ;;  %v1737_v58 = vmul.f32 1.442695, %v1731_v49 }
 0x5a3   :  { %v1739_v10 = vmul.f32 1.442695, %v1732_v9 }
 0x5a4   :  { %2092 = vpow2.f32 %v1733_v1 }
 0x5a5   :  { %2094 = vpow2.f32 %v1735_v5 }
 0x5a6   :  { %2096 = vpow2.f32 %v1737_v58 }
 0x5a7   :  { %2098 = vpow2.f32 %v1739_v10 }
 0x5ae   :  { %v2093_v12 = vpop.eup %2092 }
 0x5af   :  { %v2095_v7 = vpop.eup %2094  ;;  %v1817_v14 = vadd.f32 -1.0, %v2093_v12 }
 0x5b0   :  { %v2097_v33 = vpop.eup %2096  ;;  %v1818_v30 = vadd.f32 -1.0, %v2095_v7 }
 0x5b1   :  { %v2099_v17 = vpop.eup %2098  ;;  %v1819_v25 = vadd.f32 -1.0, %v2097_v33  ;;  %v1745_v44 = vsel %vm1725_vm8, %v1721_v8, %v1817_v14 }
 0x5b2   :  { %v1820_v54 = vadd.f32 -1.0, %v2099_v17  ;;  %v1746_v55 = vsel %vm1726_vm9, %v1722_v6, %v1818_v30  ;;  %1749 = vst.msk [vmem:[%s2666_s6] sm:$0xff] %vm180_vm2, %v1745_v44 }
 0x5b3   :  { %v1747_v61 = vsel %vm1727_vm10, %v1723_v20, %v1819_v25  ;;  %1750 = vst.msk [vmem:[%s2666_s6 + $0x8] sm:$0xff] %vm180_vm2, %v1746_v55 }
 0x5b4   :  { %v1748_v15 = vsel %vm1728_vm11, %v1724_v0, %v1820_v54  ;;  %1751 = vst.msk [vmem:[%s2666_s6 + $0x10] sm:$0xff] %vm180_vm2, %v1747_v61 }
 0x5b5   :  { %1752 = vst.msk [vmem:[%s2666_s6 + $0x18] sm:$0xff] %vm180_vm2, %v1748_v15 }

</bundles_post_ra>
